<compile_context>
chip_gen: v7x
topology: tpu7x:2x2x1
jax: 0.10.0
libtpu: 0.0.40
codegen_flags: <defaults>
</compile_context>

<pallas_src>
import functools

import jax
import jax.numpy as jnp
from jax.experimental import pallas as pl
from jax.experimental.pallas import tpu as pltpu


# 102*128.  For the real M = 34650*3 = 103950 this gives 8 grid steps
# (even -> 4/4 on v7x's two TensorCores) with a ~4.2 MB f32 basis tile
# (~8.4 MB double-buffered), inside every generation's scoped-VMEM budget.
_DEFAULT_TN = 13056


def _round_up(x, m):
    return ((x + m - 1) // m) * m


def _linear_3dmm_kernel(x_ref, sig_ref, b_ref, mu_ref, o_ref):
    # Scale the (tiny) parameter vector on the VPU; keep it f32 so only the
    # basis is quantized when b_tex is stored in a narrow dtype.
    xs = x_ref[...] * sig_ref[...]                          # (B, K) f32
    b = b_ref[...]                                          # (K, tn) stored dtype
    if b.dtype != jnp.float32:
        # In-VMEM upcast of the streamed tile (bf16 / fp8-on-v7x paths);
        # a few hundred VPU cycles, fully hidden under the HBM DMA.
        b = b.astype(jnp.float32)
    acc = jnp.dot(xs, b, preferred_element_type=jnp.float32)  # (B, tn) f32, MXU
    o_ref[...] = (acc + mu_ref[...]).astype(o_ref.dtype)


@functools.partial(jax.jit, static_argnames=("point_num", "tn"))
def linear_3dmm_forward(norm_tex_para, sig_tex, b_tex, mu_tex,
                        *, point_num, tn=None):
    """Pallas equivalent of Linear_3DMM.forward.

    norm_tex_para: (B, K) float32
    sig_tex:       (K,)   float32
    b_tex:         (K, point_num*3)  — streamed in its STORED dtype.
                   Store it as bf16 (or fp8 e4m3 on v7x) at weight-load time
                   to halve / quarter the dominant HBM stream; accumulation
                   stays float32 either way.
    mu_tex:        (point_num*3,)   float32
    tn:            output-column tile (multiple of 128).  Default 13056 works
                   for v5e/v6e/v7x; pass a different static value to retune.
    returns        (B, point_num, 3) float32
    """
    B, K = norm_tex_para.shape
    M = point_num * 3
    assert b_tex.shape == (K, M)

    if tn is None:
        tn = _DEFAULT_TN
    # Never tile wider than the (128-rounded) output width.
    tn = min(tn, _round_up(M, 128))
    assert tn % 128 == 0

    x2 = norm_tex_para.astype(jnp.float32)
    sig2 = sig_tex.reshape(1, K).astype(jnp.float32)
    mu2 = mu_tex.reshape(1, M).astype(jnp.float32)
    # NOTE: b_tex is passed through untouched — no per-call astype (that would
    # cost a full HBM read+write convert of the basis every call).

    grid = (pl.cdiv(M, tn),)

    basis_itemsize = jnp.dtype(b_tex.dtype).itemsize

    # Explicit scoped-VMEM budget derived from the actual per-step footprint,
    # so large tiles are safe on v5e's 16 MiB default and we never brush
    # v7x's 64 MiB physical VMEM.
    tile_vmem = 2 * (K * tn * basis_itemsize)   # double-buffered b_tex tile
    tile_vmem += 2 * (tn * 4)                   # mu tile
    tile_vmem += 2 * (B * tn * 4)               # output tile
    tile_vmem += 2 * ((B * K + K) * 4)          # params
    vmem_limit = min(max(int(tile_vmem * 2), 16 << 20), 48 << 20)

    # Advisory cost hint: dominated by streaming b_tex from HBM.
    b_bytes = K * M * basis_itemsize
    bytes_accessed = b_bytes + 4 * (M + B * K + K + B * M)
    cost = pl.CostEstimate(flops=2 * B * K * M,
                           bytes_accessed=bytes_accessed,
                           transcendentals=0)

    out = pl.pallas_call(
        _linear_3dmm_kernel,
        out_shape=jax.ShapeDtypeStruct((B, M), jnp.float32),
        grid_spec=pltpu.PrefetchScalarGridSpec(
            num_scalar_prefetch=0,
            grid=grid,
            in_specs=[
                pl.BlockSpec((B, K), lambda j: (0, 0)),   # norm_tex_para (whole)
                pl.BlockSpec((1, K), lambda j: (0, 0)),   # sig_tex       (whole)
                pl.BlockSpec((K, tn), lambda j: (0, j)),  # b_tex column tile
                pl.BlockSpec((1, tn), lambda j: (0, j)),  # mu_tex column tile
            ],
            out_specs=pl.BlockSpec((B, tn), lambda j: (0, j)),
        ),
        compiler_params=pltpu.CompilerParams(
            dimension_semantics=("parallel",),
            vmem_limit_bytes=vmem_limit),
        cost_estimate=cost,
    )(x2, sig2, b_tex, mu2)

    return out.reshape(B, point_num, 3)


if __name__ == "__main__":
    # Small synthetic shapes consistent with the module's forward.
    # (Real model: point_num=34650, ~80-dim texture basis.  point_num=2050
    #  gives M=6150, which is NOT a multiple of 128 — exercising the same
    #  masked-last-tile path the real M=103950 hits.)
    B = 2          # batch of texture-parameter vectors
    K = 80         # texture basis dimension
    point_num = 2050
    M = point_num * 3

    key = jax.random.PRNGKey(0)
    k1, k2, k3, k4 = jax.random.split(key, 4)
    norm_tex_para = jax.random.normal(k1, (B, K), dtype=jnp.float32)
    sig_tex = jax.random.uniform(k2, (K,), dtype=jnp.float32) + 0.5
    b_tex = jax.random.normal(k3, (K, M), dtype=jnp.float32) * 0.01
    mu_tex = jax.random.normal(k4, (M,), dtype=jnp.float32)

    # Reference in plain JAX (same math as the PyTorch module).
    ref = ((norm_tex_para * sig_tex[None, :]) @ b_tex + mu_tex[None, :]) \
        .reshape(B, point_num, 3)

    # 1) f32 basis, default (single-tile at this small M) schedule:
    #    bit-faithful to the reference.
    texture = linear_3dmm_forward(norm_tex_para, sig_tex, b_tex, mu_tex,
                                  point_num=point_num)
    texture = jax.block_until_ready(texture)
    assert texture.shape == (B, point_num, 3)
    assert jnp.allclose(texture, ref, atol=1e-4, rtol=1e-4)

    # 2) Multi-step grid with a partially-masked last tile (the schedule the
    #    real M=103950 case uses).
    texture2 = linear_3dmm_forward(norm_tex_para, sig_tex, b_tex, mu_tex,
                                   point_num=point_num, tn=2048)
    texture2 = jax.block_until_ready(texture2)
    assert jnp.allclose(texture2, ref, atol=1e-4, rtol=1e-4)

    # 3) bf16-stored basis: cast ONCE here (standing in for weight-load time);
    #    the kernel streams it as-is and accumulates in f32.
    b_tex_bf16 = b_tex.astype(jnp.bfloat16)
    texture_bf16 = linear_3dmm_forward(norm_tex_para, sig_tex, b_tex_bf16,
                                       mu_tex, point_num=point_num)
    texture_bf16 = jax.block_until_ready(texture_bf16)
    assert texture_bf16.shape == (B, point_num, 3)
    assert jnp.allclose(texture_bf16, ref, atol=5e-2, rtol=5e-2)
    # TODO(synk): on v7x, storing b_tex as fp8 (e4m3) quarters the HBM stream;
    # the kernel already handles it via the in-VMEM upcast, gate on accuracy.

    print("KERNEL_OK")
</pallas_src>

<mosaic_0001>
module attributes {stable_mosaic.version = 11 : i64} {
  func.func @_linear_3dmm_kernel(%arg0: i32, %arg1: memref<2x80xf32, #tpu.memory_space<vmem>>, %arg2: memref<1x80xf32, #tpu.memory_space<vmem>>, %arg3: memref<80x6272xf32, #tpu.memory_space<vmem>>, %arg4: memref<1x6272xf32, #tpu.memory_space<vmem>>, %arg5: memref<2x6272xf32, #tpu.memory_space<vmem>>) attributes {dimension_semantics = [#tpu.dimension_semantics<parallel>], iteration_bounds = array<i64: 1>, scalar_prefetch = 0 : i64, scratch_operands = 0 : i64, tpu.core_type = #tpu.core_type<tc>, window_params = [{pipeline_mode = #tpu.pipeline_mode<synchronous>, transform_indices = @transform_0, window_bounds = array<i64: 2, 80>}, {pipeline_mode = #tpu.pipeline_mode<synchronous>, transform_indices = @transform_1, window_bounds = array<i64: 1, 80>}, {transform_indices = @transform_2, window_bounds = array<i64: 80, 6272>}, {transform_indices = @transform_3, window_bounds = array<i64: 1, 6272>}, {transform_indices = @transform_4, window_bounds = array<i64: 2, 6272>}]} {
    %c0 = arith.constant 0 : index
    %c0_0 = arith.constant 0 : index
    %0 = vector.load %arg1[%c0, %c0_0] : memref<2x80xf32, #tpu.memory_space<vmem>>, vector<2x80xf32>
    %c0_1 = arith.constant 0 : index
    %c0_2 = arith.constant 0 : index
    %1 = vector.load %arg2[%c0_1, %c0_2] : memref<1x80xf32, #tpu.memory_space<vmem>>, vector<1x80xf32>
    %2 = vector.broadcast %1 : vector<1x80xf32> to vector<2x80xf32>
    %3 = arith.mulf %0, %2 : vector<2x80xf32>
    %c0_3 = arith.constant 0 : index
    %c0_4 = arith.constant 0 : index
    %4 = vector.load %arg3[%c0_3, %c0_4] : memref<80x6272xf32, #tpu.memory_space<vmem>>, vector<80x6272xf32>
    %cst = arith.constant dense<0.000000e+00> : vector<2x6272xf32>
    %5 = tpu.matmul %3, %4, %cst {dimension_numbers = #tpu.dot_dimension_numbers<[1], [0], [0], [1], [0, 0, 1, 1], [], []>} : vector<2x80xf32>, vector<80x6272xf32>, vector<2x6272xf32> -> vector<2x6272xf32>
    %c0_5 = arith.constant 0 : index
    %c0_6 = arith.constant 0 : index
    %6 = vector.load %arg4[%c0_5, %c0_6] : memref<1x6272xf32, #tpu.memory_space<vmem>>, vector<1x6272xf32>
    %7 = vector.broadcast %6 : vector<1x6272xf32> to vector<2x6272xf32>
    %8 = arith.addf %5, %7 : vector<2x6272xf32>
    %c0_7 = arith.constant 0 : index
    %c0_8 = arith.constant 0 : index
    %9 = vector.load %arg5[%c0_7, %c0_8] : memref<2x6272xf32, #tpu.memory_space<vmem>>, vector<2x6272xf32>
    tpu.vector_store %arg5[%c0_7, %c0_8], %8 {strides = array<i32>} : memref<2x6272xf32, #tpu.memory_space<vmem>>, vector<2x6272xf32>,
    return
  }
  func.func @transform_0(%arg0: i32) -> (i32, i32) {
    %c0_i32 = arith.constant 0 : i32
    %c0_i32_0 = arith.constant 0 : i32
    %c0_i32_1 = arith.constant 0 : i32
    return %c0_i32, %c0_i32_0 : i32, i32
  }
  func.func @transform_1(%arg0: i32) -> (i32, i32) {
    %c0_i32 = arith.constant 0 : i32
    %c0_i32_0 = arith.constant 0 : i32
    %c0_i32_1 = arith.constant 0 : i32
    return %c0_i32, %c0_i32_0 : i32, i32
  }
  func.func @transform_2(%arg0: i32) -> (i32, i32) {
    %c0_i32 = arith.constant 0 : i32
    %c0_i32_0 = arith.constant 0 : i32
    return %c0_i32, %arg0 : i32, i32
  }
  func.func @transform_3(%arg0: i32) -> (i32, i32) {
    %c0_i32 = arith.constant 0 : i32
    %c0_i32_0 = arith.constant 0 : i32
    return %c0_i32, %arg0 : i32, i32
  }
  func.func @transform_4(%arg0: i32) -> (i32, i32) {
    %c0_i32 = arith.constant 0 : i32
    %c0_i32_0 = arith.constant 0 : i32
    return %c0_i32, %arg0 : i32, i32
  }
}

</mosaic_0001>

<bundles_post_ra>
// kernel: linear_3dmm_forward.1
= control target key start
LH: loop header
LB: loop body
LE: loop exit
PB: predicated region body
PF: predicated region fallthrough
CT: control target
= control target key end

     0   :  { %9 = vsyncpa [#allocation3], 0  ;;  %s3836_s0 = inlined_call_operand.hbm [shape: f32[2,80], index: 0, kind: input, shape index: {}]   ;;  %s3837_s1 = inlined_call_operand.hbm [shape: f32[1,80], index: 1, kind: input, shape index: {}]   ;;  %s3838_s2 = inlined_call_operand.hbm [shape: f32[80,6150], index: 2, kind: input, shape index: {}]   ;;  %s3839_s3 = inlined_call_operand.vmem [shape: f32[1,6150], index: 3, kind: input, shape index: {}]   ;;  %s3840_s4 = inlined_call_operand.vmem [shape: f32[2,6150], index: 4, kind: output, shape index: {}]  }
   0x1   :  { %10 = vsyncpa [#allocation5], 0  ;;  %s3518_s15 = smov [#allocation4]   ;;  %s3519_s17 = smov [#allocation2]  }
   0x2   :  { %s27_s16 = sshll.u32 %s3518_s15, 4  ;;  %s17_s18 = sshll.u32 %s3519_s17, 4  ;;  %s28_s16 = int_to_ptr.vmem [resolvable:$true] %s27_s16  ;;  %s18_s18 = int_to_ptr.vmem [resolvable:$true] %s17_s18 }
   0x3   :  { %s3448_s21 = scalar_lea.hbm %s3837_s1, 16 }
   0x4   :  { %p3449_p0 = scmp.ne.s32.totalorder %s3837_s1, %s3448_s21  ;;  %p3452_p1 = scmp.lt.u32.totalorder %s3448_s21, %s3837_s1 }
   0x6   :  { %p3454_p2 = pnand %p3452_p1, %p3449_p0 }
   0x8   :  { %3457 = shalt.err (!%p3454_p2)
}
   0x9   :  { %s3458_s26 = scalar_lea.vmem %s28_s16, 16  ;;  %s3462_s27 = scalar_lea.vmem %s28_s16, 32 }
   0xa   :  { %p3459_p3 = scmp.ne.s32.totalorder %s28_s16, %s3458_s26  ;;  %p3463_p4 = scmp.lt.s32.totalorder %s28_s16, %s28_s16 }
   0xb   :  { %p3464_p5 = scmp.lt.s32.totalorder %s3462_s27, %s3458_s26 }
   0xd   :  { %p3465_p6 = por %p3464_p5, %p3463_p4 }
   0xf   :  { %p3466_p7 = pnand %p3465_p6, %p3459_p3 }
  0x11   :  { %3469 = shalt.err (!%p3466_p7)
}
  0x12   :  { %30 = dma.hbm_to_vmem [thread:$0]  %s3837_s1, 16, %s28_s16, [#allocation5]  }
  0x13   :  { %s3470_s6 = scalar_lea.hbm %s3836_s0, 32 }
  0x14   :  { %p3471_p8 = scmp.ne.s32.totalorder %s3836_s0, %s3470_s6  ;;  %p3474_p9 = scmp.lt.u32.totalorder %s3470_s6, %s3836_s0 }
  0x16   :  { %p3476_p10 = pnand %p3474_p9, %p3471_p8 }
  0x18   :  { %3479 = shalt.err (!%p3476_p10)
}
  0x19   :  { %s3480_s11 = scalar_lea.vmem %s18_s18, 32  ;;  %p3485_p12 = scmp.lt.s32.totalorder %s18_s18, %s18_s18 }
  0x1a   :  { %p3481_p11 = scmp.ne.s32.totalorder %s18_s18, %s3480_s11  ;;  %p3486_p13 = scmp.lt.s32.totalorder %s3480_s11, %s3480_s11 }
  0x1c   :  { %p3487_p0 = por %p3486_p13, %p3485_p12 }
  0x1e   :  { %p3488_p1 = pnand %p3487_p0, %p3481_p11 }
  0x20   :  { %3491 = shalt.err (!%p3488_p1)
}
  0x21   :  { %20 = dma.hbm_to_vmem [thread:$0]  %s3836_s0, 32, %s18_s18, [#allocation3]  }
  0x22   :  { %s3520_s13 = smov [#allocation6]   ;;  %s3492_s17 = scalar_lea.hbm %s3838_s2, 62720 }
  0x23   :  { %s36_s14 = sshll.u32 %s3520_s13, 4  ;;  %p3493_p2 = scmp.ne.s32.totalorder %s3838_s2, %s3492_s17  ;;  %s37_s14 = int_to_ptr.vmem [resolvable:$true] %s36_s14 }
  0x24   :  { %p3496_p3 = scmp.lt.u32.totalorder %s3492_s17, %s3838_s2 }
  0x26   :  { %p3498_p4 = pnand %p3496_p3, %p3493_p2 }
  0x28   :  { %3501 = shalt.err (!%p3498_p4)
}
  0x29   :  { %s3502_s23 = scalar_lea.vmem %s37_s14, 62720  ;;  %p3507_p6 = scmp.lt.s32.totalorder %s37_s14, %s37_s14 }
  0x2a   :  { %p3503_p5 = scmp.ne.s32.totalorder %s37_s14, %s3502_s23  ;;  %p3508_p7 = scmp.lt.s32.totalorder %s3502_s23, %s3502_s23 }
  0x2c   :  { %p3509_p8 = por %p3508_p7, %p3507_p6 }
  0x2e   :  { %p3510_p9 = pnand %p3509_p8, %p3503_p5 }
  0x30   :  { %3513 = shalt.err (!%p3510_p9)
}
  0x31   :  { %s3521_s0 = smov 6272   ;;  %s3522_s18 = smov 392  }
  0x32   :  { %42 = dma.hbm_to_vmem [thread:$0]  %s3838_s2, 62720, %s37_s14, [#allocation5], %s3521_s0, %s3521_s0, %s3522_s18  }
  0x33   :  { %3514 = dma.done.wait [#allocation3], 32  }
  0x34   :  { %3515 = vsyncadd [#allocation3], 4294967264 }
  0x35   :  { %3516 = dma.done.wait [#allocation5], 62736  }
  0x36   :  { %3517 = vsyncadd [#allocation5], 4294904560  ;;  %v3523_v0 = vmov 0.0   ;;  %v64_v1 = vld [vmem:[#allocation6 + $0x8] sm:$0xff]  ;;  %v113_v2 = vld [vmem:[#allocation6 + $0x190] sm:$0xff]  ;;  %vm812_vm0 = vcmask 654336  }
  0x37   :  { %880 = vmatprep.mubr.f32.mxu0 %v3523_v0  ;;  %951 = vmatprep.mubr.f32.mxu1 %v3523_v0  ;;  %v66_v3 = vld [vmem:[#allocation6 + $0x18] sm:$0xff]  ;;  %v2944_v4 = vpack.c.bf16 %v113_v2, %v64_v1  ;;  %v115_v5 = vld [vmem:[#allocation6 + $0x1a0] sm:$0xff]  ;;  %v112_v7 = vld [vmem:[#allocation6 + $0x188] sm:$0xff]  ;;  %vm3526_vm1 = vmmov 0  }
  0x38   :  { %v63_v6 = vld [vmem:[#allocation6] sm:$0xff]  ;;  %v2964_v8 = vpack.c.bf16 %v115_v5, %v66_v3  ;;  %v65_v10 = vld [vmem:[#allocation6 + $0x10] sm:$0xff]  ;;  %v114_v11 = vld [vmem:[#allocation6 + $0x198] sm:$0xff] }
  0x39   :  { %v2946_v9 = vpack.c.bf16 %v112_v7, %v63_v6  ;;  %v162_v12 = vld [vmem:[#allocation6 + $0x318] sm:$0xff]  ;;  %2945 = vmatprep.subr.bf16.mxu0 %v2944_v4  ;;  %v2966_v13 = vpack.c.bf16 %v114_v11, %v65_v10  ;;  %v211_v14 = vld [vmem:[#allocation6 + $0x4a0] sm:$0xff]  ;;  %v164_v15 = vld [vmem:[#allocation6 + $0x328] sm:$0xff] }
  0x3a   :  { %v213_v16 = vld [vmem:[#allocation6 + $0x4b0] sm:$0xff]  ;;  %2965 = vmatprep.subr.bf16.mxu1 %v2964_v8  ;;  %v2948_v17 = vpack.c.bf16 %v211_v14, %v162_v12  ;;  %v210_v20 = vld [vmem:[#allocation6 + $0x498] sm:$0xff]  ;;  %v163_v21 = vld [vmem:[#allocation6 + $0x320] sm:$0xff] }
  0x3b   :  { %2947 = vmatpush1.bf16.msra.mxu0 %v2946_v9  ;;  %v2968_v18 = vpack.c.bf16 %v213_v16, %v164_v15  ;;  %v161_v19 = vld [vmem:[#allocation6 + $0x310] sm:$0xff]  ;;  %2967 = vmatpush1.bf16.msra.mxu1 %v2966_v13  ;;  %v212_v23 = vld [vmem:[#allocation6 + $0x4a8] sm:$0xff]  ;;  %v262_v28 = vld [vmem:[#allocation6 + $0x638] sm:$0xff] }
  0x3c   :  { %v2950_v22 = vpack.c.bf16 %v210_v20, %v161_v19  ;;  %v260_v24 = vld [vmem:[#allocation6 + $0x628] sm:$0xff]  ;;  %v309_v25 = vld [vmem:[#allocation6 + $0x7b0] sm:$0xff]  ;;  %2949 = vmatprep.subr.bf16.mxu0 %v2948_v17  ;;  %v2970_v26 = vpack.c.bf16 %v212_v23, %v163_v21  ;;  %v311_v29 = vld [vmem:[#allocation6 + $0x7c0] sm:$0xff] }
  0x3d   :  { %2969 = vmatprep.subr.bf16.mxu1 %v2968_v18  ;;  %v2952_v27 = vpack.c.bf16 %v309_v25, %v260_v24  ;;  %v259_v30 = vld [vmem:[#allocation6 + $0x620] sm:$0xff]  ;;  %v2972_v31 = vpack.c.bf16 %v311_v29, %v262_v28  ;;  %v308_v32 = vld [vmem:[#allocation6 + $0x7a8] sm:$0xff]  ;;  %v261_v33 = vld [vmem:[#allocation6 + $0x630] sm:$0xff] }
  0x3e   :  { %v310_v34 = vld [vmem:[#allocation6 + $0x7b8] sm:$0xff]  ;;  %v2954_v35 = vpack.c.bf16 %v308_v32, %v259_v30  ;;  %v407_v37 = vld [vmem:[#allocation6 + $0xac0] sm:$0xff]  ;;  %v360_v38 = vld [vmem:[#allocation6 + $0x948] sm:$0xff] }
  0x3f   :  { %2951 = vmatpush1.bf16.msra.mxu0 %v2950_v22  ;;  %v358_v36 = vld [vmem:[#allocation6 + $0x938] sm:$0xff]  ;;  %2971 = vmatpush1.bf16.msra.mxu1 %v2970_v26  ;;  %v2974_v39 = vpack.c.bf16 %v310_v34, %v261_v33  ;;  %v409_v41 = vld [vmem:[#allocation6 + $0xad0] sm:$0xff]  ;;  %v359_v45 = vld [vmem:[#allocation6 + $0x940] sm:$0xff] }
  0x40   :  { %2953 = vmatprep.subr.bf16.mxu0 %v2952_v27  ;;  %v2956_v40 = vpack.c.bf16 %v407_v37, %v358_v36  ;;  %v357_v42 = vld [vmem:[#allocation6 + $0x930] sm:$0xff]  ;;  %v406_v43 = vld [vmem:[#allocation6 + $0xab8] sm:$0xff]  ;;  %2973 = vmatprep.subr.bf16.mxu1 %v2972_v31  ;;  %v2976_v44 = vpack.c.bf16 %v409_v41, %v360_v38  ;;  %v408_v46 = vld [vmem:[#allocation6 + $0xac8] sm:$0xff] }
  0x41   :  { %v456_v47 = vld [vmem:[#allocation6 + $0xc48] sm:$0xff]  ;;  %v505_v48 = vld [vmem:[#allocation6 + $0xdd0] sm:$0xff]  ;;  %v458_v49 = vld [vmem:[#allocation6 + $0xc58] sm:$0xff]  ;;  %v2958_v51 = vpack.c.bf16 %v406_v43, %v357_v42  ;;  %v2978_v52 = vpack.c.bf16 %v408_v46, %v359_v45 }
  0x42   :  { %v507_v50 = vld [vmem:[#allocation6 + $0xde0] sm:$0xff]  ;;  %v2960_v53 = vpack.c.bf16 %v505_v48, %v456_v47  ;;  %v504_v55 = vld [vmem:[#allocation6 + $0xdc8] sm:$0xff]  ;;  %v457_v56 = vld [vmem:[#allocation6 + $0xc50] sm:$0xff] }
  0x43   :  { %2955 = vmatpush1.bf16.msra.mxu0 %v2954_v35  ;;  %2975 = vmatpush1.bf16.msra.mxu1 %v2974_v39  ;;  %v455_v54 = vld [vmem:[#allocation6 + $0xc40] sm:$0xff]  ;;  %v2980_v57 = vpack.c.bf16 %v507_v50, %v458_v49  ;;  %v506_v58 = vld [vmem:[#allocation6 + $0xdd8] sm:$0xff]  ;;  %v68_v59 = vld [vmem:[#allocation6 + $0x28] sm:$0xff] }
  0x44   :  { %2957 = vmatprep.subr.bf16.mxu0 %v2956_v40  ;;  %2977 = vmatprep.subr.bf16.mxu1 %v2976_v44  ;;  %v117_v60 = vld [vmem:[#allocation6 + $0x1b0] sm:$0xff]  ;;  %v70_v61 = vld [vmem:[#allocation6 + $0x38] sm:$0xff]  ;;  %v119_v62 = vld [vmem:[#allocation6 + $0x1c0] sm:$0xff]  ;;  %v2962_v63 = vpack.c.bf16 %v504_v55, %v455_v54  ;;  %v2982_v3 = vpack.c.bf16 %v506_v58, %v457_v56 }
  0x45   :  { %v54_v1 = vld [vmem:[#allocation2] sm:$0x3]  ;;  %v2882_v2 = vld [vmem:[#allocation4] ss:$0 sm:$0xff]  ;;  %v2984_v4 = vpack.c.bf16 %v117_v60, %v68_v59  ;;  %v67_v5 = vld [vmem:[#allocation6 + $0x20] sm:$0xff]  ;;  %v3004_v8 = vpack.c.bf16 %v119_v62, %v70_v61 }
  0x46   :  { %v116_v6 = vld [vmem:[#allocation6 + $0x1a8] sm:$0xff]  ;;  %v69_v7 = vld [vmem:[#allocation6 + $0x30] sm:$0xff]  ;;  %v118_v9 = vld [vmem:[#allocation6 + $0x1b8] sm:$0xff]  ;;  %v3590_v12 = vmul.f32 %v2882_v2, %v54_v1 }
  0x47   :  { %2959 = vmatpush1.bf16.msra.mxu0 %v2958_v51  ;;  %2979 = vmatpush1.bf16.msra.mxu1 %v2978_v52  ;;  %v166_v10 = vld [vmem:[#allocation6 + $0x338] sm:$0xff]  ;;  %v215_v11 = vld [vmem:[#allocation6 + $0x4c0] sm:$0xff]  ;;  %v168_v13 = vld [vmem:[#allocation6 + $0x348] sm:$0xff]  ;;  %v2986_v15 = vpack.c.bf16 %v116_v6, %v67_v5  ;;  %v3006_v16 = vpack.c.bf16 %v118_v9, %v69_v7 }
  0x48   :  { %2961 = vmatprep.subr.bf16.mxu0 %v2960_v53  ;;  %2981 = vmatprep.subr.bf16.mxu1 %v2980_v57  ;;  %v217_v14 = vld [vmem:[#allocation6 + $0x4d0] sm:$0xff]  ;;  %v2988_v17 = vpack.c.bf16 %v215_v11, %v166_v10  ;;  %v214_v19 = vld [vmem:[#allocation6 + $0x4b8] sm:$0xff]  ;;  %v167_v20 = vld [vmem:[#allocation6 + $0x340] sm:$0xff] }
  0x49   :  { %v165_v18 = vld [vmem:[#allocation6 + $0x330] sm:$0xff]  ;;  %v3008_v21 = vpack.c.bf16 %v217_v14, %v168_v13  ;;  %v216_v22 = vld [vmem:[#allocation6 + $0x4c8] sm:$0xff]  ;;  %v266_v25 = vld [vmem:[#allocation6 + $0x658] sm:$0xff] }
  0x4a   :  { %v264_v23 = vld [vmem:[#allocation6 + $0x648] sm:$0xff]  ;;  %v313_v24 = vld [vmem:[#allocation6 + $0x7d0] sm:$0xff]  ;;  %v315_v26 = vld [vmem:[#allocation6 + $0x7e0] sm:$0xff]  ;;  %v2990_v27 = vpack.c.bf16 %v214_v19, %v165_v18  ;;  %v3010_v28 = vpack.c.bf16 %v216_v22, %v167_v20 }
  0x4b   :  { %2963 = vmatpush1.bf16.msra.mxu0 %v2962_v63  ;;  %2983 = vmatpush1.bf16.msra.mxu1 %v2982_v3  ;;  %v2992_v29 = vpack.c.bf16 %v313_v24, %v264_v23  ;;  %v263_v30 = vld [vmem:[#allocation6 + $0x640] sm:$0xff]  ;;  %v312_v31 = vld [vmem:[#allocation6 + $0x7c8] sm:$0xff]  ;;  %v265_v32 = vld [vmem:[#allocation6 + $0x650] sm:$0xff]  ;;  %v3012_v33 = vpack.c.bf16 %v315_v26, %v266_v25 }
  0x4c   :  { %2985 = vmatprep.subr.bf16.mxu0 %v2984_v4  ;;  %3005 = vmatprep.subr.bf16.mxu1 %v3004_v8  ;;  %v314_v34 = vld [vmem:[#allocation6 + $0x7d8] sm:$0xff]  ;;  %v411_v36 = vld [vmem:[#allocation6 + $0xae0] sm:$0xff]  ;;  %v364_v37 = vld [vmem:[#allocation6 + $0x968] sm:$0xff]  ;;  %v2994_v39 = vpack.c.bf16 %v312_v31, %v263_v30 }
  0x4d   :  { %v362_v35 = vld [vmem:[#allocation6 + $0x958] sm:$0xff]  ;;  %v413_v38 = vld [vmem:[#allocation6 + $0xaf0] sm:$0xff]  ;;  %v3014_v40 = vpack.c.bf16 %v314_v34, %v265_v32  ;;  %v363_v44 = vld [vmem:[#allocation6 + $0x960] sm:$0xff] }
  0x4e   :  { %2884 = vmatmul.mubr.msk.f32.vlgmr.msra.gmra.mrb[0].mxu0 %vm812_vm0, %v3590_v12  ;;  %2885 = vmatmul.mubr.msk.f32.vlgmr.msra.gmra.mrb[0].mxu1 %vm812_vm0, %v3590_v12  ;;  %v2996_v41 = vpack.c.bf16 %v411_v36, %v362_v35  ;;  %v361_v42 = vld [vmem:[#allocation6 + $0x950] sm:$0xff]  ;;  %v410_v43 = vld [vmem:[#allocation6 + $0xad8] sm:$0xff]  ;;  %v3016_v45 = vpack.c.bf16 %v413_v38, %v364_v37  ;;  %v412_v46 = vld [vmem:[#allocation6 + $0xae8] sm:$0xff] }
  0x4f   :  { %2987 = vmatpush1.bf16.msra.mxu0 %v2986_v15  ;;  %3007 = vmatpush1.bf16.msra.mxu1 %v3006_v16  ;;  %v460_v47 = vld [vmem:[#allocation6 + $0xc68] sm:$0xff]  ;;  %v509_v48 = vld [vmem:[#allocation6 + $0xdf0] sm:$0xff]  ;;  %v462_v49 = vld [vmem:[#allocation6 + $0xc78] sm:$0xff]  ;;  %v2998_v51 = vpack.c.bf16 %v410_v43, %v361_v42  ;;  %v3018_v52 = vpack.c.bf16 %v412_v46, %v363_v44 }
  0x50   :  { %2989 = vmatprep.subr.bf16.mxu0 %v2988_v17  ;;  %3009 = vmatprep.subr.bf16.mxu1 %v3008_v21  ;;  %v511_v50 = vld [vmem:[#allocation6 + $0xe00] sm:$0xff]  ;;  %v3000_v53 = vpack.c.bf16 %v509_v48, %v460_v47  ;;  %v508_v55 = vld [vmem:[#allocation6 + $0xde8] sm:$0xff]  ;;  %v461_v56 = vld [vmem:[#allocation6 + $0xc70] sm:$0xff] }
  0x51   :  { %1022 = vmatprep.mubr.f32.mxu0 %v3523_v0  ;;  %1093 = vmatprep.mubr.f32.mxu1 %v3523_v0  ;;  %v459_v54 = vld [vmem:[#allocation6 + $0xc60] sm:$0xff]  ;;  %v3020_v57 = vpack.c.bf16 %v511_v50, %v462_v49  ;;  %v510_v58 = vld [vmem:[#allocation6 + $0xdf8] sm:$0xff]  ;;  %v72_v59 = vld [vmem:[#allocation6 + $0x48] sm:$0xff] }
  0x52   :  { %v121_v60 = vld [vmem:[#allocation6 + $0x1d0] sm:$0xff]  ;;  %v74_v61 = vld [vmem:[#allocation6 + $0x58] sm:$0xff]  ;;  %v123_v62 = vld [vmem:[#allocation6 + $0x1e0] sm:$0xff]  ;;  %v3002_v63 = vpack.c.bf16 %v508_v55, %v459_v54  ;;  %v3022_v1 = vpack.c.bf16 %v510_v58, %v461_v56 }
  0x53   :  { %2991 = vmatpush1.bf16.msra.mxu0 %v2990_v27  ;;  %3011 = vmatpush1.bf16.msra.mxu1 %v3010_v28  ;;  %v3024_v2 = vpack.c.bf16 %v121_v60, %v72_v59  ;;  %v71_v3 = vld [vmem:[#allocation6 + $0x40] sm:$0xff]  ;;  %v120_v4 = vld [vmem:[#allocation6 + $0x1c8] sm:$0xff]  ;;  %v73_v5 = vld [vmem:[#allocation6 + $0x50] sm:$0xff]  ;;  %v3044_v6 = vpack.c.bf16 %v123_v62, %v74_v61 }
  0x54   :  { %2993 = vmatprep.subr.bf16.mxu0 %v2992_v29  ;;  %3013 = vmatprep.subr.bf16.mxu1 %v3012_v33  ;;  %v122_v7 = vld [vmem:[#allocation6 + $0x1d8] sm:$0xff]  ;;  %v219_v9 = vld [vmem:[#allocation6 + $0x4e0] sm:$0xff]  ;;  %v172_v10 = vld [vmem:[#allocation6 + $0x368] sm:$0xff]  ;;  %v3026_v13 = vpack.c.bf16 %v120_v4, %v71_v3 }
  0x55   :  { %v170_v8 = vld [vmem:[#allocation6 + $0x358] sm:$0xff]  ;;  %v221_v11 = vld [vmem:[#allocation6 + $0x4f0] sm:$0xff]  ;;  %v3046_v14 = vpack.c.bf16 %v122_v7, %v73_v5  ;;  %v171_v18 = vld [vmem:[#allocation6 + $0x360] sm:$0xff] }
  0x56   :  { %v3028_v15 = vpack.c.bf16 %v219_v9, %v170_v8  ;;  %v169_v16 = vld [vmem:[#allocation6 + $0x350] sm:$0xff]  ;;  %v218_v17 = vld [vmem:[#allocation6 + $0x4d8] sm:$0xff]  ;;  %v3048_v19 = vpack.c.bf16 %v221_v11, %v172_v10  ;;  %v220_v20 = vld [vmem:[#allocation6 + $0x4e8] sm:$0xff] }
  0x57   :  { %2995 = vmatpush1.bf16.msra.mxu0 %v2994_v39  ;;  %3015 = vmatpush1.bf16.msra.mxu1 %v3014_v40  ;;  %v268_v21 = vld [vmem:[#allocation6 + $0x668] sm:$0xff]  ;;  %v317_v22 = vld [vmem:[#allocation6 + $0x7f0] sm:$0xff]  ;;  %v270_v23 = vld [vmem:[#allocation6 + $0x678] sm:$0xff]  ;;  %v3030_v25 = vpack.c.bf16 %v218_v17, %v169_v16  ;;  %v3050_v26 = vpack.c.bf16 %v220_v20, %v171_v18 }
  0x58   :  { %2997 = vmatprep.subr.bf16.mxu0 %v2996_v41  ;;  %3017 = vmatprep.subr.bf16.mxu1 %v3016_v45  ;;  %v319_v24 = vld [vmem:[#allocation6 + $0x800] sm:$0xff]  ;;  %v3032_v27 = vpack.c.bf16 %v317_v22, %v268_v21  ;;  %v316_v29 = vld [vmem:[#allocation6 + $0x7e8] sm:$0xff]  ;;  %v269_v30 = vld [vmem:[#allocation6 + $0x670] sm:$0xff] }
  0x59   :  { %v267_v28 = vld [vmem:[#allocation6 + $0x660] sm:$0xff]  ;;  %v3052_v31 = vpack.c.bf16 %v319_v24, %v270_v23  ;;  %v318_v32 = vld [vmem:[#allocation6 + $0x7f8] sm:$0xff]  ;;  %v368_v35 = vld [vmem:[#allocation6 + $0x988] sm:$0xff] }
  0x5a   :  { %v366_v33 = vld [vmem:[#allocation6 + $0x978] sm:$0xff]  ;;  %v415_v34 = vld [vmem:[#allocation6 + $0xb00] sm:$0xff]  ;;  %v417_v36 = vld [vmem:[#allocation6 + $0xb10] sm:$0xff]  ;;  %v3034_v37 = vpack.c.bf16 %v316_v29, %v267_v28  ;;  %v3054_v38 = vpack.c.bf16 %v318_v32, %v269_v30 }
  0x5b   :  { %2999 = vmatpush1.bf16.msra.mxu0 %v2998_v51  ;;  %3019 = vmatpush1.bf16.msra.mxu1 %v3018_v52  ;;  %v3036_v39 = vpack.c.bf16 %v415_v34, %v366_v33  ;;  %v365_v40 = vld [vmem:[#allocation6 + $0x970] sm:$0xff]  ;;  %v414_v41 = vld [vmem:[#allocation6 + $0xaf8] sm:$0xff]  ;;  %v367_v42 = vld [vmem:[#allocation6 + $0x980] sm:$0xff]  ;;  %v3056_v43 = vpack.c.bf16 %v417_v36, %v368_v35 }
  0x5c   :  { %3001 = vmatprep.subr.bf16.mxu0 %v3000_v53  ;;  %3021 = vmatprep.subr.bf16.mxu1 %v3020_v57  ;;  %v416_v44 = vld [vmem:[#allocation6 + $0xb08] sm:$0xff]  ;;  %v513_v46 = vld [vmem:[#allocation6 + $0xe10] sm:$0xff]  ;;  %v466_v47 = vld [vmem:[#allocation6 + $0xc98] sm:$0xff]  ;;  %v3038_v49 = vpack.c.bf16 %v414_v41, %v365_v40 }
  0x5d   :  { %v464_v45 = vld [vmem:[#allocation6 + $0xc88] sm:$0xff]  ;;  %v515_v48 = vld [vmem:[#allocation6 + $0xe20] sm:$0xff]  ;;  %v3058_v50 = vpack.c.bf16 %v416_v44, %v367_v42  ;;  %v465_v54 = vld [vmem:[#allocation6 + $0xc90] sm:$0xff] }
  0x5e   :  { %v3040_v51 = vpack.c.bf16 %v513_v46, %v464_v45  ;;  %v463_v52 = vld [vmem:[#allocation6 + $0xc80] sm:$0xff]  ;;  %v512_v53 = vld [vmem:[#allocation6 + $0xe08] sm:$0xff]  ;;  %v3060_v55 = vpack.c.bf16 %v515_v48, %v466_v47  ;;  %v514_v56 = vld [vmem:[#allocation6 + $0xe18] sm:$0xff] }
  0x5f   :  { %3003 = vmatpush1.bf16.msra.mxu0 %v3002_v63  ;;  %3023 = vmatpush1.bf16.msra.mxu1 %v3022_v1  ;;  %v76_v57 = vld [vmem:[#allocation6 + $0x68] sm:$0xff]  ;;  %v125_v58 = vld [vmem:[#allocation6 + $0x1f0] sm:$0xff]  ;;  %v78_v59 = vld [vmem:[#allocation6 + $0x78] sm:$0xff]  ;;  %v3042_v61 = vpack.c.bf16 %v512_v53, %v463_v52  ;;  %v3062_v62 = vpack.c.bf16 %v514_v56, %v465_v54 }
  0x60   :  { %3025 = vmatprep.subr.bf16.mxu0 %v3024_v2  ;;  %3045 = vmatprep.subr.bf16.mxu1 %v3044_v6  ;;  %v127_v60 = vld [vmem:[#allocation6 + $0x200] sm:$0xff]  ;;  %v3064_v63 = vpack.c.bf16 %v125_v58, %v76_v57  ;;  %v124_v2 = vld [vmem:[#allocation6 + $0x1e8] sm:$0xff]  ;;  %v77_v3 = vld [vmem:[#allocation6 + $0x70] sm:$0xff] }
  0x61   :  { %v75_v1 = vld [vmem:[#allocation6 + $0x60] sm:$0xff]  ;;  %v3084_v4 = vpack.c.bf16 %v127_v60, %v78_v59  ;;  %v126_v5 = vld [vmem:[#allocation6 + $0x1f8] sm:$0xff]  ;;  %v176_v8 = vld [vmem:[#allocation6 + $0x388] sm:$0xff] }
  0x62   :  { %2886 = vmatmul.mubr.msk.f32.vlgmr.msra.gmra.mrb[2].mxu0 %vm812_vm0, %v3590_v12  ;;  %2887 = vmatmul.mubr.msk.f32.vlgmr.msra.gmra.mrb[2].mxu1 %vm812_vm0, %v3590_v12  ;;  %v174_v6 = vld [vmem:[#allocation6 + $0x378] sm:$0xff]  ;;  %v223_v7 = vld [vmem:[#allocation6 + $0x500] sm:$0xff]  ;;  %v225_v9 = vld [vmem:[#allocation6 + $0x510] sm:$0xff]  ;;  %v3066_v10 = vpack.c.bf16 %v124_v2, %v75_v1  ;;  %v3086_v11 = vpack.c.bf16 %v126_v5, %v77_v3 }
  0x63   :  { %3027 = vmatpush1.bf16.msra.mxu0 %v3026_v13  ;;  %3047 = vmatpush1.bf16.msra.mxu1 %v3046_v14  ;;  %v3068_v13 = vpack.c.bf16 %v223_v7, %v174_v6  ;;  %v173_v14 = vld [vmem:[#allocation6 + $0x370] sm:$0xff]  ;;  %v175_v16 = vld [vmem:[#allocation6 + $0x380] sm:$0xff]  ;;  %v3088_v17 = vpack.c.bf16 %v225_v9, %v176_v8  ;;  %v224_v18 = vld [vmem:[#allocation6 + $0x508] sm:$0xff] }
  0x64   :  { %3029 = vmatprep.subr.bf16.mxu0 %v3028_v15  ;;  %3049 = vmatprep.subr.bf16.mxu1 %v3048_v19  ;;  %v222_v15 = vld [vmem:[#allocation6 + $0x4f8] sm:$0xff]  ;;  %v272_v19 = vld [vmem:[#allocation6 + $0x688] sm:$0xff]  ;;  %v321_v20 = vld [vmem:[#allocation6 + $0x810] sm:$0xff]  ;;  %v3090_v24 = vpack.c.bf16 %v224_v18, %v175_v16 }
  0x65   :  { %1164 = vmatprep.mubr.f32.mxu0 %v3523_v0  ;;  %1235 = vmatprep.mubr.f32.mxu1 %v3523_v0  ;;  %v274_v21 = vld [vmem:[#allocation6 + $0x698] sm:$0xff]  ;;  %v323_v22 = vld [vmem:[#allocation6 + $0x820] sm:$0xff]  ;;  %v3070_v23 = vpack.c.bf16 %v222_v15, %v173_v14  ;;  %v273_v28 = vld [vmem:[#allocation6 + $0x690] sm:$0xff] }
  0x66   :  { %v3092_v29 = vpack.c.bf16 %v323_v22, %v274_v21  ;;  %v322_v30 = vld [vmem:[#allocation6 + $0x818] sm:$0xff]  ;;  %v419_v32 = vld [vmem:[#allocation6 + $0xb20] sm:$0xff]  ;;  %v372_v33 = vld [vmem:[#allocation6 + $0x9a8] sm:$0xff] }
  0x67   :  { %3031 = vmatpush1.bf16.msra.mxu0 %v3030_v25  ;;  %3051 = vmatpush1.bf16.msra.mxu1 %v3050_v26  ;;  %v3072_v25 = vpack.c.bf16 %v321_v20, %v272_v19  ;;  %v271_v26 = vld [vmem:[#allocation6 + $0x680] sm:$0xff]  ;;  %v421_v34 = vld [vmem:[#allocation6 + $0xb30] sm:$0xff]  ;;  %v3094_v36 = vpack.c.bf16 %v322_v30, %v273_v28  ;;  %v420_v42 = vld [vmem:[#allocation6 + $0xb28] sm:$0xff] }
  0x68   :  { %3033 = vmatprep.subr.bf16.mxu0 %v3032_v27  ;;  %3053 = vmatprep.subr.bf16.mxu1 %v3052_v31  ;;  %v320_v27 = vld [vmem:[#allocation6 + $0x808] sm:$0xff]  ;;  %v370_v31 = vld [vmem:[#allocation6 + $0x998] sm:$0xff]  ;;  %v371_v40 = vld [vmem:[#allocation6 + $0x9a0] sm:$0xff]  ;;  %v3096_v41 = vpack.c.bf16 %v421_v34, %v372_v33 }
  0x69   :  { %v3074_v35 = vpack.c.bf16 %v320_v27, %v271_v26  ;;  %v517_v44 = vld [vmem:[#allocation6 + $0xe30] sm:$0xff]  ;;  %v470_v45 = vld [vmem:[#allocation6 + $0xcb8] sm:$0xff]  ;;  %v519_v46 = vld [vmem:[#allocation6 + $0xe40] sm:$0xff]  ;;  %v3098_v48 = vpack.c.bf16 %v420_v42, %v371_v40 }
  0x6a   :  { %v469_v52 = vld [vmem:[#allocation6 + $0xcb0] sm:$0xff]  ;;  %v3100_v53 = vpack.c.bf16 %v519_v46, %v470_v45  ;;  %v518_v54 = vld [vmem:[#allocation6 + $0xe38] sm:$0xff]  ;;  %v131_v58 = vld [vmem:[#allocation6 + $0x220] sm:$0xff] }
  0x6b   :  { %3035 = vmatpush1.bf16.msra.mxu0 %v3034_v37  ;;  %3055 = vmatpush1.bf16.msra.mxu1 %v3054_v38  ;;  %v3076_v37 = vpack.c.bf16 %v419_v32, %v370_v31  ;;  %v369_v38 = vld [vmem:[#allocation6 + $0x990] sm:$0xff]  ;;  %v82_v57 = vld [vmem:[#allocation6 + $0x98] sm:$0xff]  ;;  %v3102_v60 = vpack.c.bf16 %v518_v54, %v469_v52  ;;  %v227_v5 = vld [vmem:[#allocation6 + $0x520] sm:$0xff] }
  0x6c   :  { %3037 = vmatprep.subr.bf16.mxu0 %v3036_v39  ;;  %3057 = vmatprep.subr.bf16.mxu1 %v3056_v43  ;;  %v418_v39 = vld [vmem:[#allocation6 + $0xb18] sm:$0xff]  ;;  %v468_v43 = vld [vmem:[#allocation6 + $0xca8] sm:$0xff]  ;;  %v129_v56 = vld [vmem:[#allocation6 + $0x210] sm:$0xff]  ;;  %v3124_v2 = vpack.c.bf16 %v131_v58, %v82_v57 }
  0x6d   :  { %v3078_v47 = vpack.c.bf16 %v418_v39, %v369_v38  ;;  %v81_v1 = vld [vmem:[#allocation6 + $0x90] sm:$0xff]  ;;  %v130_v3 = vld [vmem:[#allocation6 + $0x218] sm:$0xff]  ;;  %v180_v6 = vld [vmem:[#allocation6 + $0x3a8] sm:$0xff] }
  0x6e   :  { %v229_v7 = vld [vmem:[#allocation6 + $0x530] sm:$0xff]  ;;  %v3126_v9 = vpack.c.bf16 %v130_v3, %v81_v1  ;;  %v179_v14 = vld [vmem:[#allocation6 + $0x3a0] sm:$0xff]  ;;  %v228_v16 = vld [vmem:[#allocation6 + $0x528] sm:$0xff] }
  0x6f   :  { %3039 = vmatpush1.bf16.msra.mxu0 %v3038_v49  ;;  %3059 = vmatpush1.bf16.msra.mxu1 %v3058_v50  ;;  %v3080_v49 = vpack.c.bf16 %v517_v44, %v468_v43  ;;  %v467_v50 = vld [vmem:[#allocation6 + $0xca0] sm:$0xff]  ;;  %v3128_v15 = vpack.c.bf16 %v229_v7, %v180_v6  ;;  %v325_v18 = vld [vmem:[#allocation6 + $0x830] sm:$0xff]  ;;  %v278_v19 = vld [vmem:[#allocation6 + $0x6b8] sm:$0xff]  ;;  %v3130_v22 = vpack.c.bf16 %v228_v16, %v179_v14 }
  0x70   :  { %3041 = vmatprep.subr.bf16.mxu0 %v3040_v51  ;;  %3061 = vmatprep.subr.bf16.mxu1 %v3060_v55  ;;  %v516_v51 = vld [vmem:[#allocation6 + $0xe28] sm:$0xff]  ;;  %v327_v20 = vld [vmem:[#allocation6 + $0x840] sm:$0xff]  ;;  %v277_v26 = vld [vmem:[#allocation6 + $0x6b0] sm:$0xff] }
  0x71   :  { %v80_v55 = vld [vmem:[#allocation6 + $0x88] sm:$0xff]  ;;  %v3082_v59 = vpack.c.bf16 %v516_v51, %v467_v50  ;;  %v3132_v27 = vpack.c.bf16 %v327_v20, %v278_v19  ;;  %v326_v28 = vld [vmem:[#allocation6 + $0x838] sm:$0xff]  ;;  %v423_v30 = vld [vmem:[#allocation6 + $0xb40] sm:$0xff] }
  0x72   :  { %v376_v31 = vld [vmem:[#allocation6 + $0x9c8] sm:$0xff]  ;;  %v425_v32 = vld [vmem:[#allocation6 + $0xb50] sm:$0xff]  ;;  %v3134_v34 = vpack.c.bf16 %v326_v28, %v277_v26  ;;  %v375_v38 = vld [vmem:[#allocation6 + $0x9c0] sm:$0xff] }
  0x73   :  { %3043 = vmatpush1.bf16.msra.mxu0 %v3042_v61  ;;  %3063 = vmatpush1.bf16.msra.mxu1 %v3062_v62  ;;  %v3104_v61 = vpack.c.bf16 %v129_v56, %v80_v55  ;;  %v79_v62 = vld [vmem:[#allocation6 + $0x80] sm:$0xff]  ;;  %v3136_v39 = vpack.c.bf16 %v425_v32, %v376_v31  ;;  %v424_v40 = vld [vmem:[#allocation6 + $0xb48] sm:$0xff]  ;;  %v521_v42 = vld [vmem:[#allocation6 + $0xe50] sm:$0xff] }
  0x74   :  { %3065 = vmatprep.subr.bf16.mxu0 %v3064_v63  ;;  %3085 = vmatprep.subr.bf16.mxu1 %v3084_v4  ;;  %v128_v63 = vld [vmem:[#allocation6 + $0x208] sm:$0xff]  ;;  %v178_v4 = vld [vmem:[#allocation6 + $0x398] sm:$0xff]  ;;  %v523_v44 = vld [vmem:[#allocation6 + $0xe60] sm:$0xff]  ;;  %v3138_v46 = vpack.c.bf16 %v424_v40, %v375_v38 }
  0x75   :  { %v3106_v8 = vpack.c.bf16 %v128_v63, %v79_v62  ;;  %v474_v43 = vld [vmem:[#allocation6 + $0xcd8] sm:$0xff]  ;;  %v473_v50 = vld [vmem:[#allocation6 + $0xcd0] sm:$0xff]  ;;  %v135_v56 = vld [vmem:[#allocation6 + $0x240] sm:$0xff] }
  0x76   :  { %2888 = vmatmul.mubr.msk.f32.vlgmr.msra.gmra.mrb[4].mxu0 %vm812_vm0, %v3590_v12  ;;  %2889 = vmatmul.mubr.msk.f32.vlgmr.msra.gmra.mrb[4].mxu1 %vm812_vm0, %v3590_v12  ;;  %v3140_v51 = vpack.c.bf16 %v523_v44, %v474_v43  ;;  %v522_v52 = vld [vmem:[#allocation6 + $0xe58] sm:$0xff]  ;;  %v133_v54 = vld [vmem:[#allocation6 + $0x230] sm:$0xff]  ;;  %v231_v3 = vld [vmem:[#allocation6 + $0x540] sm:$0xff] }
  0x77   :  { %3067 = vmatpush1.bf16.msra.mxu0 %v3066_v10  ;;  %3087 = vmatpush1.bf16.msra.mxu1 %v3086_v11  ;;  %v3108_v10 = vpack.c.bf16 %v227_v5, %v178_v4  ;;  %v177_v11 = vld [vmem:[#allocation6 + $0x390] sm:$0xff]  ;;  %v86_v55 = vld [vmem:[#allocation6 + $0xb8] sm:$0xff]  ;;  %v3142_v58 = vpack.c.bf16 %v522_v52, %v473_v50  ;;  %v184_v4 = vld [vmem:[#allocation6 + $0x3c8] sm:$0xff] }
  0x78   :  { %3069 = vmatprep.subr.bf16.mxu0 %v3068_v13  ;;  %3089 = vmatprep.subr.bf16.mxu1 %v3088_v17  ;;  %v226_v13 = vld [vmem:[#allocation6 + $0x518] sm:$0xff]  ;;  %v276_v17 = vld [vmem:[#allocation6 + $0x6a8] sm:$0xff]  ;;  %v85_v62 = vld [vmem:[#allocation6 + $0xb0] sm:$0xff]  ;;  %v3164_v63 = vpack.c.bf16 %v135_v56, %v86_v55 }
  0x79   :  { %1306 = vmatprep.mubr.f32.mxu0 %v3523_v0  ;;  %1377 = vmatprep.mubr.f32.mxu1 %v3523_v0  ;;  %v3110_v21 = vpack.c.bf16 %v226_v13, %v177_v11  ;;  %v134_v1 = vld [vmem:[#allocation6 + $0x238] sm:$0xff]  ;;  %v233_v5 = vld [vmem:[#allocation6 + $0x550] sm:$0xff]  ;;  %v183_v11 = vld [vmem:[#allocation6 + $0x3c0] sm:$0xff] }
  0x7a   :  { %v3166_v7 = vpack.c.bf16 %v134_v1, %v85_v62  ;;  %v3168_v13 = vpack.c.bf16 %v233_v5, %v184_v4  ;;  %v232_v14 = vld [vmem:[#allocation6 + $0x548] sm:$0xff]  ;;  %v329_v16 = vld [vmem:[#allocation6 + $0x850] sm:$0xff]  ;;  %v330_v26 = vld [vmem:[#allocation6 + $0x858] sm:$0xff] }
  0x7b   :  { %3071 = vmatpush1.bf16.msra.mxu0 %v3070_v23  ;;  %3091 = vmatpush1.bf16.msra.mxu1 %v3090_v24  ;;  %v3112_v23 = vpack.c.bf16 %v325_v18, %v276_v17  ;;  %v275_v24 = vld [vmem:[#allocation6 + $0x6a0] sm:$0xff]  ;;  %v282_v17 = vld [vmem:[#allocation6 + $0x6d8] sm:$0xff]  ;;  %v3170_v20 = vpack.c.bf16 %v232_v14, %v183_v11  ;;  %v428_v38 = vld [vmem:[#allocation6 + $0xb68] sm:$0xff] }
  0x7c   :  { %3073 = vmatprep.subr.bf16.mxu0 %v3072_v25  ;;  %3093 = vmatprep.subr.bf16.mxu1 %v3092_v29  ;;  %v324_v25 = vld [vmem:[#allocation6 + $0x828] sm:$0xff]  ;;  %v374_v29 = vld [vmem:[#allocation6 + $0x9b8] sm:$0xff]  ;;  %v331_v18 = vld [vmem:[#allocation6 + $0x860] sm:$0xff] }
  0x7d   :  { %v3114_v33 = vpack.c.bf16 %v324_v25, %v275_v24  ;;  %v281_v24 = vld [vmem:[#allocation6 + $0x6d0] sm:$0xff]  ;;  %v3172_v25 = vpack.c.bf16 %v331_v18, %v282_v17  ;;  %v427_v28 = vld [vmem:[#allocation6 + $0xb60] sm:$0xff]  ;;  %v526_v50 = vld [vmem:[#allocation6 + $0xe78] sm:$0xff] }
  0x7e   :  { %v3174_v32 = vpack.c.bf16 %v330_v26, %v281_v24  ;;  %v525_v40 = vld [vmem:[#allocation6 + $0xe70] sm:$0xff]  ;;  %v138_v62 = vld [vmem:[#allocation6 + $0x258] sm:$0xff]  ;;  %v235_v1 = vld [vmem:[#allocation6 + $0x560] sm:$0xff] }
  0x7f   :  { %3075 = vmatpush1.bf16.msra.mxu0 %v3074_v35  ;;  %3095 = vmatpush1.bf16.msra.mxu1 %v3094_v36  ;;  %v3116_v35 = vpack.c.bf16 %v423_v30, %v374_v29  ;;  %v373_v36 = vld [vmem:[#allocation6 + $0x9b0] sm:$0xff]  ;;  %v380_v29 = vld [vmem:[#allocation6 + $0x9e8] sm:$0xff]  ;;  %v334_v24 = vld [vmem:[#allocation6 + $0x878] sm:$0xff] }
  0x80   :  { %3077 = vmatprep.subr.bf16.mxu0 %v3076_v37  ;;  %3097 = vmatprep.subr.bf16.mxu1 %v3096_v41  ;;  %v422_v37 = vld [vmem:[#allocation6 + $0xb38] sm:$0xff]  ;;  %v472_v41 = vld [vmem:[#allocation6 + $0xcc8] sm:$0xff]  ;;  %v429_v30 = vld [vmem:[#allocation6 + $0xb70] sm:$0xff] }
  0x81   :  { %v3118_v45 = vpack.c.bf16 %v422_v37, %v373_v36  ;;  %v379_v36 = vld [vmem:[#allocation6 + $0x9e0] sm:$0xff]  ;;  %v3176_v37 = vpack.c.bf16 %v429_v30, %v380_v29  ;;  %v137_v52 = vld [vmem:[#allocation6 + $0x250] sm:$0xff]  ;;  %v236_v11 = vld [vmem:[#allocation6 + $0x568] sm:$0xff] }
  0x82   :  { %v3178_v44 = vpack.c.bf16 %v428_v38, %v379_v36  ;;  %v333_v14 = vld [vmem:[#allocation6 + $0x870] sm:$0xff]  ;;  %v431_v26 = vld [vmem:[#allocation6 + $0xb80] sm:$0xff]  ;;  %v432_v36 = vld [vmem:[#allocation6 + $0xb88] sm:$0xff] }
  0x83   :  { %3079 = vmatpush1.bf16.msra.mxu0 %v3078_v47  ;;  %3099 = vmatpush1.bf16.msra.mxu1 %v3098_v48  ;;  %v3120_v47 = vpack.c.bf16 %v521_v42, %v472_v41  ;;  %v471_v48 = vld [vmem:[#allocation6 + $0xcc0] sm:$0xff]  ;;  %v478_v41 = vld [vmem:[#allocation6 + $0xcf8] sm:$0xff]  ;;  %v529_v38 = vld [vmem:[#allocation6 + $0xe90] sm:$0xff] }
  0x84   :  { %3081 = vmatprep.subr.bf16.mxu0 %v3080_v49  ;;  %3101 = vmatprep.subr.bf16.mxu1 %v3100_v53  ;;  %v520_v49 = vld [vmem:[#allocation6 + $0xe48] sm:$0xff]  ;;  %v527_v42 = vld [vmem:[#allocation6 + $0xe80] sm:$0xff] }
  0x85   :  { %v84_v53 = vld [vmem:[#allocation6 + $0xa8] sm:$0xff]  ;;  %v3122_v57 = vpack.c.bf16 %v520_v49, %v471_v48  ;;  %v477_v48 = vld [vmem:[#allocation6 + $0xcf0] sm:$0xff]  ;;  %v3180_v49 = vpack.c.bf16 %v527_v42, %v478_v41 }
  0x86   :  { %v3182_v56 = vpack.c.bf16 %v526_v50, %v477_v48  ;;  %v530_v48 = vld [vmem:[#allocation6 + $0xe98] sm:$0xff]  ;;  %v141_v50 = vld [vmem:[#allocation6 + $0x270] sm:$0xff] }
  0x87   :  { %3083 = vmatpush1.bf16.msra.mxu0 %v3082_v59  ;;  %3103 = vmatpush1.bf16.msra.mxu1 %v3102_v60  ;;  %v3144_v59 = vpack.c.bf16 %v133_v54, %v84_v53  ;;  %v83_v60 = vld [vmem:[#allocation6 + $0xa0] sm:$0xff]  ;;  %v90_v53 = vld [vmem:[#allocation6 + $0xd8] sm:$0xff] }
  0x88   :  { %3105 = vmatprep.subr.bf16.mxu0 %v3104_v61  ;;  %3125 = vmatprep.subr.bf16.mxu1 %v3124_v2  ;;  %v132_v61 = vld [vmem:[#allocation6 + $0x228] sm:$0xff]  ;;  %v182_v2 = vld [vmem:[#allocation6 + $0x3b8] sm:$0xff]  ;;  %v139_v54 = vld [vmem:[#allocation6 + $0x260] sm:$0xff] }
  0x89   :  { %v3146_v6 = vpack.c.bf16 %v132_v61, %v83_v60  ;;  %v89_v60 = vld [vmem:[#allocation6 + $0xd0] sm:$0xff]  ;;  %v3204_v61 = vpack.c.bf16 %v139_v54, %v90_v53 }
  0x8a   :  { %2890 = vmatmul.mubr.msk.f32.vlgmr.msra.gmra.mrb[6].mxu0 %vm812_vm0, %v3590_v12  ;;  %2891 = vmatmul.mubr.msk.f32.vlgmr.msra.gmra.mrb[6].mxu1 %vm812_vm0, %v3590_v12  ;;  %v3206_v5 = vpack.c.bf16 %v138_v62, %v89_v60  ;;  %v142_v60 = vld [vmem:[#allocation6 + $0x278] sm:$0xff]  ;;  %v239_v62 = vld [vmem:[#allocation6 + $0x580] sm:$0xff] }
  0x8b   :  { %3107 = vmatpush1.bf16.msra.mxu0 %v3106_v8  ;;  %3127 = vmatpush1.bf16.msra.mxu1 %v3126_v9  ;;  %v3148_v8 = vpack.c.bf16 %v231_v3, %v182_v2  ;;  %v181_v9 = vld [vmem:[#allocation6 + $0x3b0] sm:$0xff]  ;;  %v188_v2 = vld [vmem:[#allocation6 + $0x3e8] sm:$0xff] }
  0x8c   :  { %3109 = vmatprep.subr.bf16.mxu0 %v3108_v10  ;;  %3129 = vmatprep.subr.bf16.mxu1 %v3128_v15  ;;  %v230_v10 = vld [vmem:[#allocation6 + $0x538] sm:$0xff]  ;;  %v280_v15 = vld [vmem:[#allocation6 + $0x6c8] sm:$0xff]  ;;  %v237_v3 = vld [vmem:[#allocation6 + $0x570] sm:$0xff] }
  0x8d   :  { %1448 = vmatprep.mubr.f32.mxu0 %v3523_v0  ;;  %1519 = vmatprep.mubr.f32.mxu1 %v3523_v0  ;;  %v3150_v19 = vpack.c.bf16 %v230_v10, %v181_v9  ;;  %v187_v9 = vld [vmem:[#allocation6 + $0x3e0] sm:$0xff]  ;;  %v3208_v10 = vpack.c.bf16 %v237_v3, %v188_v2 }
  0x8e   :  { %v3210_v18 = vpack.c.bf16 %v236_v11, %v187_v9  ;;  %v240_v9 = vld [vmem:[#allocation6 + $0x588] sm:$0xff]  ;;  %v337_v11 = vld [vmem:[#allocation6 + $0x890] sm:$0xff] }
  0x8f   :  { %3111 = vmatpush1.bf16.msra.mxu0 %v3110_v21  ;;  %3131 = vmatpush1.bf16.msra.mxu1 %v3130_v22  ;;  %v3152_v21 = vpack.c.bf16 %v329_v16, %v280_v15  ;;  %v279_v22 = vld [vmem:[#allocation6 + $0x6c0] sm:$0xff]  ;;  %v286_v15 = vld [vmem:[#allocation6 + $0x6f8] sm:$0xff] }
  0x90   :  { %3113 = vmatprep.subr.bf16.mxu0 %v3112_v23  ;;  %3133 = vmatprep.subr.bf16.mxu1 %v3132_v27  ;;  %v328_v23 = vld [vmem:[#allocation6 + $0x848] sm:$0xff]  ;;  %v378_v27 = vld [vmem:[#allocation6 + $0x9d8] sm:$0xff]  ;;  %v335_v16 = vld [vmem:[#allocation6 + $0x880] sm:$0xff] }
  0x91   :  { %v3154_v31 = vpack.c.bf16 %v328_v23, %v279_v22  ;;  %v285_v22 = vld [vmem:[#allocation6 + $0x6f0] sm:$0xff]  ;;  %v3212_v23 = vpack.c.bf16 %v335_v16, %v286_v15 }
  0x92   :  { %v3214_v30 = vpack.c.bf16 %v334_v24, %v285_v22  ;;  %v338_v22 = vld [vmem:[#allocation6 + $0x898] sm:$0xff]  ;;  %v435_v24 = vld [vmem:[#allocation6 + $0xba0] sm:$0xff] }
  0x93   :  { %3115 = vmatpush1.bf16.msra.mxu0 %v3114_v33  ;;  %3135 = vmatpush1.bf16.msra.mxu1 %v3134_v34  ;;  %v3156_v33 = vpack.c.bf16 %v427_v28, %v378_v27  ;;  %v377_v34 = vld [vmem:[#allocation6 + $0x9d0] sm:$0xff]  ;;  %v384_v27 = vld [vmem:[#allocation6 + $0xa08] sm:$0xff] }
  0x94   :  { %3117 = vmatprep.subr.bf16.mxu0 %v3116_v35  ;;  %3137 = vmatprep.subr.bf16.mxu1 %v3136_v39  ;;  %v426_v35 = vld [vmem:[#allocation6 + $0xb58] sm:$0xff]  ;;  %v476_v39 = vld [vmem:[#allocation6 + $0xce8] sm:$0xff]  ;;  %v433_v28 = vld [vmem:[#allocation6 + $0xb90] sm:$0xff] }
  0x95   :  { %v3158_v43 = vpack.c.bf16 %v426_v35, %v377_v34  ;;  %v383_v34 = vld [vmem:[#allocation6 + $0xa00] sm:$0xff]  ;;  %v3216_v35 = vpack.c.bf16 %v433_v28, %v384_v27 }
  0x96   :  { %v3218_v42 = vpack.c.bf16 %v432_v36, %v383_v34  ;;  %v436_v34 = vld [vmem:[#allocation6 + $0xba8] sm:$0xff]  ;;  %v533_v36 = vld [vmem:[#allocation6 + $0xeb0] sm:$0xff] }
  0x97   :  { %3119 = vmatpush1.bf16.msra.mxu0 %v3118_v45  ;;  %3139 = vmatpush1.bf16.msra.mxu1 %v3138_v46  ;;  %v3160_v45 = vpack.c.bf16 %v525_v40, %v476_v39  ;;  %v475_v46 = vld [vmem:[#allocation6 + $0xce0] sm:$0xff]  ;;  %v482_v39 = vld [vmem:[#allocation6 + $0xd18] sm:$0xff] }
  0x98   :  { %3121 = vmatprep.subr.bf16.mxu0 %v3120_v47  ;;  %3141 = vmatprep.subr.bf16.mxu1 %v3140_v51  ;;  %v524_v47 = vld [vmem:[#allocation6 + $0xe68] sm:$0xff]  ;;  %v531_v40 = vld [vmem:[#allocation6 + $0xea0] sm:$0xff] }
  0x99   :  { %v88_v51 = vld [vmem:[#allocation6 + $0xc8] sm:$0xff]  ;;  %v3162_v55 = vpack.c.bf16 %v524_v47, %v475_v46  ;;  %v481_v46 = vld [vmem:[#allocation6 + $0xd10] sm:$0xff]  ;;  %v3220_v47 = vpack.c.bf16 %v531_v40, %v482_v39 }
  0x9a   :  { %v3222_v54 = vpack.c.bf16 %v530_v48, %v481_v46  ;;  %v534_v46 = vld [vmem:[#allocation6 + $0xeb8] sm:$0xff]  ;;  %v145_v48 = vld [vmem:[#allocation6 + $0x290] sm:$0xff] }
  0x9b   :  { %3123 = vmatpush1.bf16.msra.mxu0 %v3122_v57  ;;  %3143 = vmatpush1.bf16.msra.mxu1 %v3142_v58  ;;  %v3184_v57 = vpack.c.bf16 %v137_v52, %v88_v51  ;;  %v87_v58 = vld [vmem:[#allocation6 + $0xc0] sm:$0xff]  ;;  %v94_v51 = vld [vmem:[#allocation6 + $0xf8] sm:$0xff] }
  0x9c   :  { %3145 = vmatprep.subr.bf16.mxu0 %v3144_v59  ;;  %3165 = vmatprep.subr.bf16.mxu1 %v3164_v63  ;;  %v136_v59 = vld [vmem:[#allocation6 + $0x248] sm:$0xff]  ;;  %v186_v63 = vld [vmem:[#allocation6 + $0x3d8] sm:$0xff]  ;;  %v143_v52 = vld [vmem:[#allocation6 + $0x280] sm:$0xff] }
  0x9d   :  { %v3186_v4 = vpack.c.bf16 %v136_v59, %v87_v58  ;;  %v93_v58 = vld [vmem:[#allocation6 + $0xf0] sm:$0xff]  ;;  %v3244_v59 = vpack.c.bf16 %v143_v52, %v94_v51 }
  0x9e   :  { %2892 = vmatmul.mubr.msk.f32.vlgmr.msra.gmra.mrb[8].mxu0 %vm812_vm0, %v3590_v12  ;;  %2893 = vmatmul.mubr.msk.f32.vlgmr.msra.gmra.mrb[8].mxu1 %vm812_vm0, %v3590_v12  ;;  %v3246_v3 = vpack.c.bf16 %v142_v60, %v93_v58  ;;  %v146_v58 = vld [vmem:[#allocation6 + $0x298] sm:$0xff]  ;;  %v243_v60 = vld [vmem:[#allocation6 + $0x5a0] sm:$0xff] }
  0x9f   :  { %3147 = vmatpush1.bf16.msra.mxu0 %v3146_v6  ;;  %3167 = vmatpush1.bf16.msra.mxu1 %v3166_v7  ;;  %v3188_v6 = vpack.c.bf16 %v235_v1, %v186_v63  ;;  %v185_v7 = vld [vmem:[#allocation6 + $0x3d0] sm:$0xff]  ;;  %v192_v63 = vld [vmem:[#allocation6 + $0x408] sm:$0xff] }
  0xa0   :  { %3149 = vmatprep.subr.bf16.mxu0 %v3148_v8  ;;  %3169 = vmatprep.subr.bf16.mxu1 %v3168_v13  ;;  %v234_v8 = vld [vmem:[#allocation6 + $0x558] sm:$0xff]  ;;  %v284_v13 = vld [vmem:[#allocation6 + $0x6e8] sm:$0xff]  ;;  %v241_v1 = vld [vmem:[#allocation6 + $0x590] sm:$0xff] }
  0xa1   :  { %1590 = vmatprep.mubr.f32.mxu0 %v3523_v0  ;;  %1661 = vmatprep.mubr.f32.mxu1 %v3523_v0  ;;  %v3190_v17 = vpack.c.bf16 %v234_v8, %v185_v7  ;;  %v191_v7 = vld [vmem:[#allocation6 + $0x400] sm:$0xff]  ;;  %v3248_v8 = vpack.c.bf16 %v241_v1, %v192_v63 }
  0xa2   :  { %v3250_v16 = vpack.c.bf16 %v240_v9, %v191_v7  ;;  %v244_v7 = vld [vmem:[#allocation6 + $0x5a8] sm:$0xff]  ;;  %v341_v9 = vld [vmem:[#allocation6 + $0x8b0] sm:$0xff] }
  0xa3   :  { %3151 = vmatpush1.bf16.msra.mxu0 %v3150_v19  ;;  %3171 = vmatpush1.bf16.msra.mxu1 %v3170_v20  ;;  %v3192_v19 = vpack.c.bf16 %v333_v14, %v284_v13  ;;  %v283_v20 = vld [vmem:[#allocation6 + $0x6e0] sm:$0xff]  ;;  %v290_v13 = vld [vmem:[#allocation6 + $0x718] sm:$0xff] }
  0xa4   :  { %3153 = vmatprep.subr.bf16.mxu0 %v3152_v21  ;;  %3173 = vmatprep.subr.bf16.mxu1 %v3172_v25  ;;  %v332_v21 = vld [vmem:[#allocation6 + $0x868] sm:$0xff]  ;;  %v382_v25 = vld [vmem:[#allocation6 + $0x9f8] sm:$0xff]  ;;  %v339_v14 = vld [vmem:[#allocation6 + $0x8a0] sm:$0xff] }
  0xa5   :  { %v3194_v29 = vpack.c.bf16 %v332_v21, %v283_v20  ;;  %v289_v20 = vld [vmem:[#allocation6 + $0x710] sm:$0xff]  ;;  %v3252_v21 = vpack.c.bf16 %v339_v14, %v290_v13 }
  0xa6   :  { %v3254_v28 = vpack.c.bf16 %v338_v22, %v289_v20  ;;  %v342_v20 = vld [vmem:[#allocation6 + $0x8b8] sm:$0xff]  ;;  %v439_v22 = vld [vmem:[#allocation6 + $0xbc0] sm:$0xff] }
  0xa7   :  { %3155 = vmatpush1.bf16.msra.mxu0 %v3154_v31  ;;  %3175 = vmatpush1.bf16.msra.mxu1 %v3174_v32  ;;  %v3196_v31 = vpack.c.bf16 %v431_v26, %v382_v25  ;;  %v381_v32 = vld [vmem:[#allocation6 + $0x9f0] sm:$0xff]  ;;  %v388_v25 = vld [vmem:[#allocation6 + $0xa28] sm:$0xff] }
  0xa8   :  { %3157 = vmatprep.subr.bf16.mxu0 %v3156_v33  ;;  %3177 = vmatprep.subr.bf16.mxu1 %v3176_v37  ;;  %v430_v33 = vld [vmem:[#allocation6 + $0xb78] sm:$0xff]  ;;  %v480_v37 = vld [vmem:[#allocation6 + $0xd08] sm:$0xff]  ;;  %v437_v26 = vld [vmem:[#allocation6 + $0xbb0] sm:$0xff] }
  0xa9   :  { %v3198_v41 = vpack.c.bf16 %v430_v33, %v381_v32  ;;  %v387_v32 = vld [vmem:[#allocation6 + $0xa20] sm:$0xff]  ;;  %v3256_v33 = vpack.c.bf16 %v437_v26, %v388_v25 }
  0xaa   :  { %v3258_v40 = vpack.c.bf16 %v436_v34, %v387_v32  ;;  %v440_v32 = vld [vmem:[#allocation6 + $0xbc8] sm:$0xff]  ;;  %v537_v34 = vld [vmem:[#allocation6 + $0xed0] sm:$0xff] }
  0xab   :  { %3159 = vmatpush1.bf16.msra.mxu0 %v3158_v43  ;;  %3179 = vmatpush1.bf16.msra.mxu1 %v3178_v44  ;;  %v3200_v43 = vpack.c.bf16 %v529_v38, %v480_v37  ;;  %v479_v44 = vld [vmem:[#allocation6 + $0xd00] sm:$0xff]  ;;  %v486_v37 = vld [vmem:[#allocation6 + $0xd38] sm:$0xff] }
  0xac   :  { %3161 = vmatprep.subr.bf16.mxu0 %v3160_v45  ;;  %3181 = vmatprep.subr.bf16.mxu1 %v3180_v49  ;;  %v528_v45 = vld [vmem:[#allocation6 + $0xe88] sm:$0xff]  ;;  %v535_v38 = vld [vmem:[#allocation6 + $0xec0] sm:$0xff] }
  0xad   :  { %v92_v49 = vld [vmem:[#allocation6 + $0xe8] sm:$0xff]  ;;  %v3202_v53 = vpack.c.bf16 %v528_v45, %v479_v44  ;;  %v485_v44 = vld [vmem:[#allocation6 + $0xd30] sm:$0xff]  ;;  %v3260_v45 = vpack.c.bf16 %v535_v38, %v486_v37 }
  0xae   :  { %v3262_v52 = vpack.c.bf16 %v534_v46, %v485_v44  ;;  %v538_v44 = vld [vmem:[#allocation6 + $0xed8] sm:$0xff]  ;;  %v149_v46 = vld [vmem:[#allocation6 + $0x2b0] sm:$0xff] }
  0xaf   :  { %3163 = vmatpush1.bf16.msra.mxu0 %v3162_v55  ;;  %3183 = vmatpush1.bf16.msra.mxu1 %v3182_v56  ;;  %v3224_v55 = vpack.c.bf16 %v141_v50, %v92_v49  ;;  %v91_v56 = vld [vmem:[#allocation6 + $0xe0] sm:$0xff]  ;;  %v98_v49 = vld [vmem:[#allocation6 + $0x118] sm:$0xff] }
  0xb0   :  { %3185 = vmatprep.subr.bf16.mxu0 %v3184_v57  ;;  %3205 = vmatprep.subr.bf16.mxu1 %v3204_v61  ;;  %v140_v57 = vld [vmem:[#allocation6 + $0x268] sm:$0xff]  ;;  %v190_v61 = vld [vmem:[#allocation6 + $0x3f8] sm:$0xff]  ;;  %v147_v50 = vld [vmem:[#allocation6 + $0x2a0] sm:$0xff] }
  0xb1   :  { %v3226_v2 = vpack.c.bf16 %v140_v57, %v91_v56  ;;  %v97_v56 = vld [vmem:[#allocation6 + $0x110] sm:$0xff]  ;;  %v3284_v57 = vpack.c.bf16 %v147_v50, %v98_v49 }
  0xb2   :  { %2894 = vmatmul.mubr.msk.f32.vlgmr.msra.gmra.mrb[10].mxu0 %vm812_vm0, %v3590_v12  ;;  %2895 = vmatmul.mubr.msk.f32.vlgmr.msra.gmra.mrb[10].mxu1 %vm812_vm0, %v3590_v12  ;;  %v3286_v1 = vpack.c.bf16 %v146_v58, %v97_v56  ;;  %v150_v56 = vld [vmem:[#allocation6 + $0x2b8] sm:$0xff]  ;;  %v247_v58 = vld [vmem:[#allocation6 + $0x5c0] sm:$0xff] }
  0xb3   :  { %3187 = vmatpush1.bf16.msra.mxu0 %v3186_v4  ;;  %3207 = vmatpush1.bf16.msra.mxu1 %v3206_v5  ;;  %v3228_v4 = vpack.c.bf16 %v239_v62, %v190_v61  ;;  %v189_v5 = vld [vmem:[#allocation6 + $0x3f0] sm:$0xff]  ;;  %v196_v61 = vld [vmem:[#allocation6 + $0x428] sm:$0xff] }
  0xb4   :  { %3189 = vmatprep.subr.bf16.mxu0 %v3188_v6  ;;  %3209 = vmatprep.subr.bf16.mxu1 %v3208_v10  ;;  %v238_v6 = vld [vmem:[#allocation6 + $0x578] sm:$0xff]  ;;  %v288_v10 = vld [vmem:[#allocation6 + $0x708] sm:$0xff]  ;;  %v245_v62 = vld [vmem:[#allocation6 + $0x5b0] sm:$0xff] }
  0xb5   :  { %1732 = vmatprep.mubr.f32.mxu0 %v3523_v0  ;;  %1803 = vmatprep.mubr.f32.mxu1 %v3523_v0  ;;  %v3230_v15 = vpack.c.bf16 %v238_v6, %v189_v5  ;;  %v195_v5 = vld [vmem:[#allocation6 + $0x420] sm:$0xff]  ;;  %v3288_v6 = vpack.c.bf16 %v245_v62, %v196_v61 }
  0xb6   :  { %v3290_v14 = vpack.c.bf16 %v244_v7, %v195_v5  ;;  %v248_v5 = vld [vmem:[#allocation6 + $0x5c8] sm:$0xff]  ;;  %v345_v7 = vld [vmem:[#allocation6 + $0x8d0] sm:$0xff] }
  0xb7   :  { %3191 = vmatpush1.bf16.msra.mxu0 %v3190_v17  ;;  %3211 = vmatpush1.bf16.msra.mxu1 %v3210_v18  ;;  %v3232_v17 = vpack.c.bf16 %v337_v11, %v288_v10  ;;  %v287_v18 = vld [vmem:[#allocation6 + $0x700] sm:$0xff]  ;;  %v294_v10 = vld [vmem:[#allocation6 + $0x738] sm:$0xff] }
  0xb8   :  { %3193 = vmatprep.subr.bf16.mxu0 %v3192_v19  ;;  %3213 = vmatprep.subr.bf16.mxu1 %v3212_v23  ;;  %v336_v19 = vld [vmem:[#allocation6 + $0x888] sm:$0xff]  ;;  %v386_v23 = vld [vmem:[#allocation6 + $0xa18] sm:$0xff]  ;;  %v343_v11 = vld [vmem:[#allocation6 + $0x8c0] sm:$0xff] }
  0xb9   :  { %v3234_v27 = vpack.c.bf16 %v336_v19, %v287_v18  ;;  %v293_v18 = vld [vmem:[#allocation6 + $0x730] sm:$0xff]  ;;  %v3292_v19 = vpack.c.bf16 %v343_v11, %v294_v10 }
  0xba   :  { %v3294_v26 = vpack.c.bf16 %v342_v20, %v293_v18  ;;  %v346_v18 = vld [vmem:[#allocation6 + $0x8d8] sm:$0xff]  ;;  %v443_v20 = vld [vmem:[#allocation6 + $0xbe0] sm:$0xff] }
  0xbb   :  { %3195 = vmatpush1.bf16.msra.mxu0 %v3194_v29  ;;  %3215 = vmatpush1.bf16.msra.mxu1 %v3214_v30  ;;  %v3236_v29 = vpack.c.bf16 %v435_v24, %v386_v23  ;;  %v385_v30 = vld [vmem:[#allocation6 + $0xa10] sm:$0xff]  ;;  %v392_v23 = vld [vmem:[#allocation6 + $0xa48] sm:$0xff] }
  0xbc   :  { %3197 = vmatprep.subr.bf16.mxu0 %v3196_v31  ;;  %3217 = vmatprep.subr.bf16.mxu1 %v3216_v35  ;;  %v434_v31 = vld [vmem:[#allocation6 + $0xb98] sm:$0xff]  ;;  %v484_v35 = vld [vmem:[#allocation6 + $0xd28] sm:$0xff]  ;;  %v441_v24 = vld [vmem:[#allocation6 + $0xbd0] sm:$0xff] }
  0xbd   :  { %v3238_v39 = vpack.c.bf16 %v434_v31, %v385_v30  ;;  %v391_v30 = vld [vmem:[#allocation6 + $0xa40] sm:$0xff]  ;;  %v3296_v31 = vpack.c.bf16 %v441_v24, %v392_v23 }
  0xbe   :  { %v3298_v38 = vpack.c.bf16 %v440_v32, %v391_v30  ;;  %v444_v30 = vld [vmem:[#allocation6 + $0xbe8] sm:$0xff]  ;;  %v541_v32 = vld [vmem:[#allocation6 + $0xef0] sm:$0xff] }
  0xbf   :  { %3199 = vmatpush1.bf16.msra.mxu0 %v3198_v41  ;;  %3219 = vmatpush1.bf16.msra.mxu1 %v3218_v42  ;;  %v3240_v41 = vpack.c.bf16 %v533_v36, %v484_v35  ;;  %v483_v42 = vld [vmem:[#allocation6 + $0xd20] sm:$0xff]  ;;  %v490_v35 = vld [vmem:[#allocation6 + $0xd58] sm:$0xff] }
  0xc0   :  { %3201 = vmatprep.subr.bf16.mxu0 %v3200_v43  ;;  %3221 = vmatprep.subr.bf16.mxu1 %v3220_v47  ;;  %v532_v43 = vld [vmem:[#allocation6 + $0xea8] sm:$0xff]  ;;  %v539_v36 = vld [vmem:[#allocation6 + $0xee0] sm:$0xff] }
  0xc1   :  { %v96_v47 = vld [vmem:[#allocation6 + $0x108] sm:$0xff]  ;;  %v3242_v51 = vpack.c.bf16 %v532_v43, %v483_v42  ;;  %v489_v42 = vld [vmem:[#allocation6 + $0xd50] sm:$0xff]  ;;  %v3300_v43 = vpack.c.bf16 %v539_v36, %v490_v35 }
  0xc2   :  { %v3302_v50 = vpack.c.bf16 %v538_v44, %v489_v42  ;;  %v542_v42 = vld [vmem:[#allocation6 + $0xef8] sm:$0xff]  ;;  %v153_v44 = vld [vmem:[#allocation6 + $0x2d0] sm:$0xff] }
  0xc3   :  { %3203 = vmatpush1.bf16.msra.mxu0 %v3202_v53  ;;  %3223 = vmatpush1.bf16.msra.mxu1 %v3222_v54  ;;  %v3264_v53 = vpack.c.bf16 %v145_v48, %v96_v47  ;;  %v95_v54 = vld [vmem:[#allocation6 + $0x100] sm:$0xff]  ;;  %v102_v47 = vld [vmem:[#allocation6 + $0x138] sm:$0xff] }
  0xc4   :  { %3225 = vmatprep.subr.bf16.mxu0 %v3224_v55  ;;  %3245 = vmatprep.subr.bf16.mxu1 %v3244_v59  ;;  %v144_v55 = vld [vmem:[#allocation6 + $0x288] sm:$0xff]  ;;  %v194_v59 = vld [vmem:[#allocation6 + $0x418] sm:$0xff]  ;;  %v151_v48 = vld [vmem:[#allocation6 + $0x2c0] sm:$0xff] }
  0xc5   :  { %v3266_v63 = vpack.c.bf16 %v144_v55, %v95_v54  ;;  %v101_v54 = vld [vmem:[#allocation6 + $0x130] sm:$0xff]  ;;  %v3324_v55 = vpack.c.bf16 %v151_v48, %v102_v47 }
  0xc6   :  { %2896 = vmatmul.mubr.msk.f32.vlgmr.msra.gmra.mrb[12].mxu0 %vm812_vm0, %v3590_v12  ;;  %2897 = vmatmul.mubr.msk.f32.vlgmr.msra.gmra.mrb[12].mxu1 %vm812_vm0, %v3590_v12  ;;  %v3326_v62 = vpack.c.bf16 %v150_v56, %v101_v54  ;;  %v154_v54 = vld [vmem:[#allocation6 + $0x2d8] sm:$0xff]  ;;  %v251_v56 = vld [vmem:[#allocation6 + $0x5e0] sm:$0xff] }
  0xc7   :  { %3227 = vmatpush1.bf16.msra.mxu0 %v3226_v2  ;;  %3247 = vmatpush1.bf16.msra.mxu1 %v3246_v3  ;;  %v3268_v2 = vpack.c.bf16 %v243_v60, %v194_v59  ;;  %v193_v3 = vld [vmem:[#allocation6 + $0x410] sm:$0xff]  ;;  %v200_v59 = vld [vmem:[#allocation6 + $0x448] sm:$0xff] }
  0xc8   :  { %3229 = vmatprep.subr.bf16.mxu0 %v3228_v4  ;;  %3249 = vmatprep.subr.bf16.mxu1 %v3248_v8  ;;  %v242_v4 = vld [vmem:[#allocation6 + $0x598] sm:$0xff]  ;;  %v292_v8 = vld [vmem:[#allocation6 + $0x728] sm:$0xff]  ;;  %v249_v60 = vld [vmem:[#allocation6 + $0x5d0] sm:$0xff] }
  0xc9   :  { %1874 = vmatprep.mubr.f32.mxu0 %v3523_v0  ;;  %1945 = vmatprep.mubr.f32.mxu1 %v3523_v0  ;;  %v3270_v13 = vpack.c.bf16 %v242_v4, %v193_v3  ;;  %v199_v3 = vld [vmem:[#allocation6 + $0x440] sm:$0xff]  ;;  %v3328_v4 = vpack.c.bf16 %v249_v60, %v200_v59 }
  0xca   :  { %v3330_v11 = vpack.c.bf16 %v248_v5, %v199_v3  ;;  %v252_v3 = vld [vmem:[#allocation6 + $0x5e8] sm:$0xff]  ;;  %v349_v5 = vld [vmem:[#allocation6 + $0x8f0] sm:$0xff] }
  0xcb   :  { %3231 = vmatpush1.bf16.msra.mxu0 %v3230_v15  ;;  %3251 = vmatpush1.bf16.msra.mxu1 %v3250_v16  ;;  %v3272_v15 = vpack.c.bf16 %v341_v9, %v292_v8  ;;  %v291_v16 = vld [vmem:[#allocation6 + $0x720] sm:$0xff]  ;;  %v298_v8 = vld [vmem:[#allocation6 + $0x758] sm:$0xff] }
  0xcc   :  { %3233 = vmatprep.subr.bf16.mxu0 %v3232_v17  ;;  %3253 = vmatprep.subr.bf16.mxu1 %v3252_v21  ;;  %v340_v17 = vld [vmem:[#allocation6 + $0x8a8] sm:$0xff]  ;;  %v390_v21 = vld [vmem:[#allocation6 + $0xa38] sm:$0xff]  ;;  %v347_v9 = vld [vmem:[#allocation6 + $0x8e0] sm:$0xff] }
  0xcd   :  { %v3274_v25 = vpack.c.bf16 %v340_v17, %v291_v16  ;;  %v297_v16 = vld [vmem:[#allocation6 + $0x750] sm:$0xff]  ;;  %v3332_v17 = vpack.c.bf16 %v347_v9, %v298_v8 }
  0xce   :  { %v3334_v24 = vpack.c.bf16 %v346_v18, %v297_v16  ;;  %v350_v16 = vld [vmem:[#allocation6 + $0x8f8] sm:$0xff]  ;;  %v447_v18 = vld [vmem:[#allocation6 + $0xc00] sm:$0xff] }
  0xcf   :  { %3235 = vmatpush1.bf16.msra.mxu0 %v3234_v27  ;;  %3255 = vmatpush1.bf16.msra.mxu1 %v3254_v28  ;;  %v3276_v27 = vpack.c.bf16 %v439_v22, %v390_v21  ;;  %v389_v28 = vld [vmem:[#allocation6 + $0xa30] sm:$0xff]  ;;  %v396_v21 = vld [vmem:[#allocation6 + $0xa68] sm:$0xff] }
  0xd0   :  { %3237 = vmatprep.subr.bf16.mxu0 %v3236_v29  ;;  %3257 = vmatprep.subr.bf16.mxu1 %v3256_v33  ;;  %v438_v29 = vld [vmem:[#allocation6 + $0xbb8] sm:$0xff]  ;;  %v488_v33 = vld [vmem:[#allocation6 + $0xd48] sm:$0xff]  ;;  %v445_v22 = vld [vmem:[#allocation6 + $0xbf0] sm:$0xff] }
  0xd1   :  { %v3278_v37 = vpack.c.bf16 %v438_v29, %v389_v28  ;;  %v395_v28 = vld [vmem:[#allocation6 + $0xa60] sm:$0xff]  ;;  %v3336_v29 = vpack.c.bf16 %v445_v22, %v396_v21 }
  0xd2   :  { %v3338_v36 = vpack.c.bf16 %v444_v30, %v395_v28  ;;  %v448_v28 = vld [vmem:[#allocation6 + $0xc08] sm:$0xff]  ;;  %v545_v30 = vld [vmem:[#allocation6 + $0xf10] sm:$0xff] }
  0xd3   :  { %3239 = vmatpush1.bf16.msra.mxu0 %v3238_v39  ;;  %3259 = vmatpush1.bf16.msra.mxu1 %v3258_v40  ;;  %v3280_v39 = vpack.c.bf16 %v537_v34, %v488_v33  ;;  %v487_v40 = vld [vmem:[#allocation6 + $0xd40] sm:$0xff]  ;;  %v494_v33 = vld [vmem:[#allocation6 + $0xd78] sm:$0xff] }
  0xd4   :  { %3241 = vmatprep.subr.bf16.mxu0 %v3240_v41  ;;  %3261 = vmatprep.subr.bf16.mxu1 %v3260_v45  ;;  %v536_v41 = vld [vmem:[#allocation6 + $0xec8] sm:$0xff]  ;;  %v543_v34 = vld [vmem:[#allocation6 + $0xf00] sm:$0xff] }
  0xd5   :  { %v100_v45 = vld [vmem:[#allocation6 + $0x128] sm:$0xff]  ;;  %v3282_v49 = vpack.c.bf16 %v536_v41, %v487_v40  ;;  %v493_v40 = vld [vmem:[#allocation6 + $0xd70] sm:$0xff]  ;;  %v3340_v41 = vpack.c.bf16 %v543_v34, %v494_v33 }
  0xd6   :  { %v3342_v48 = vpack.c.bf16 %v542_v42, %v493_v40  ;;  %v546_v40 = vld [vmem:[#allocation6 + $0xf18] sm:$0xff]  ;;  %v157_v42 = vld [vmem:[#allocation6 + $0x2f0] sm:$0xff] }
  0xd7   :  { %3243 = vmatpush1.bf16.msra.mxu0 %v3242_v51  ;;  %3263 = vmatpush1.bf16.msra.mxu1 %v3262_v52  ;;  %v3304_v51 = vpack.c.bf16 %v149_v46, %v100_v45  ;;  %v99_v52 = vld [vmem:[#allocation6 + $0x120] sm:$0xff]  ;;  %v106_v45 = vld [vmem:[#allocation6 + $0x158] sm:$0xff] }
  0xd8   :  { %3265 = vmatprep.subr.bf16.mxu0 %v3264_v53  ;;  %3285 = vmatprep.subr.bf16.mxu1 %v3284_v57  ;;  %v148_v53 = vld [vmem:[#allocation6 + $0x2a8] sm:$0xff]  ;;  %v198_v57 = vld [vmem:[#allocation6 + $0x438] sm:$0xff]  ;;  %v155_v46 = vld [vmem:[#allocation6 + $0x2e0] sm:$0xff] }
  0xd9   :  { %v3306_v61 = vpack.c.bf16 %v148_v53, %v99_v52  ;;  %v105_v52 = vld [vmem:[#allocation6 + $0x150] sm:$0xff]  ;;  %v3364_v53 = vpack.c.bf16 %v155_v46, %v106_v45 }
  0xda   :  { %2898 = vmatmul.mubr.msk.f32.vlgmr.msra.gmra.mrb[14].mxu0 %vm812_vm0, %v3590_v12  ;;  %2899 = vmatmul.mubr.msk.f32.vlgmr.msra.gmra.mrb[14].mxu1 %vm812_vm0, %v3590_v12  ;;  %v3366_v60 = vpack.c.bf16 %v154_v54, %v105_v52  ;;  %v158_v52 = vld [vmem:[#allocation6 + $0x2f8] sm:$0xff]  ;;  %v255_v54 = vld [vmem:[#allocation6 + $0x600] sm:$0xff] }
  0xdb   :  { %3267 = vmatpush1.bf16.msra.mxu0 %v3266_v63  ;;  %3287 = vmatpush1.bf16.msra.mxu1 %v3286_v1  ;;  %v3308_v63 = vpack.c.bf16 %v247_v58, %v198_v57  ;;  %v197_v1 = vld [vmem:[#allocation6 + $0x430] sm:$0xff]  ;;  %v204_v57 = vld [vmem:[#allocation6 + $0x468] sm:$0xff] }
  0xdc   :  { %3269 = vmatprep.subr.bf16.mxu0 %v3268_v2  ;;  %3289 = vmatprep.subr.bf16.mxu1 %v3288_v6  ;;  %v246_v2 = vld [vmem:[#allocation6 + $0x5b8] sm:$0xff]  ;;  %v296_v6 = vld [vmem:[#allocation6 + $0x748] sm:$0xff]  ;;  %v253_v58 = vld [vmem:[#allocation6 + $0x5f0] sm:$0xff] }
  0xdd   :  { %2016 = vmatprep.mubr.f32.mxu0 %v3523_v0  ;;  %2087 = vmatprep.mubr.f32.mxu1 %v3523_v0  ;;  %v3310_v10 = vpack.c.bf16 %v246_v2, %v197_v1  ;;  %v203_v1 = vld [vmem:[#allocation6 + $0x460] sm:$0xff]  ;;  %v3368_v2 = vpack.c.bf16 %v253_v58, %v204_v57  ;;  %v567_v57 = vlaneseq }
  0xde   :  { %v3370_v9 = vpack.c.bf16 %v252_v3, %v203_v1  ;;  %v304_v3 = vld [vmem:[#allocation6 + $0x788] sm:$0xff] }
  0xdf   :  { %3271 = vmatpush1.bf16.msra.mxu0 %v3270_v13  ;;  %3291 = vmatpush1.bf16.msra.mxu1 %v3290_v14  ;;  %v3312_v13 = vpack.c.bf16 %v345_v7, %v296_v6  ;;  %v295_v14 = vld [vmem:[#allocation6 + $0x740] sm:$0xff]  ;;  %v302_v6 = vld [vmem:[#allocation6 + $0x778] sm:$0xff] }
  0xe0   :  { %3273 = vmatprep.subr.bf16.mxu0 %v3272_v15  ;;  %3293 = vmatprep.subr.bf16.mxu1 %v3292_v19  ;;  %v344_v15 = vld [vmem:[#allocation6 + $0x8c8] sm:$0xff]  ;;  %v394_v19 = vld [vmem:[#allocation6 + $0xa58] sm:$0xff]  ;;  %v351_v7 = vld [vmem:[#allocation6 + $0x900] sm:$0xff] }
  0xe1   :  { %v3314_v23 = vpack.c.bf16 %v344_v15, %v295_v14  ;;  %v301_v14 = vld [vmem:[#allocation6 + $0x770] sm:$0xff]  ;;  %v3372_v15 = vpack.c.bf16 %v351_v7, %v302_v6  ;;  %v355_v6 = vld [vmem:[#allocation6 + $0x920] sm:$0xff]  ;;  %v3654_v7 = vshrl.u32 %v567_v57, 7 }
  0xe2   :  { %v3374_v22 = vpack.c.bf16 %v350_v16, %v301_v14  ;;  %v305_v14 = vld [vmem:[#allocation6 + $0x790] sm:$0xff]  ;;  %v354_v16 = vld [vmem:[#allocation6 + $0x918] sm:$0xff] }
  0xe3   :  { %3275 = vmatpush1.bf16.msra.mxu0 %v3274_v25  ;;  %3295 = vmatpush1.bf16.msra.mxu1 %v3294_v26  ;;  %v3316_v25 = vpack.c.bf16 %v443_v20, %v394_v19  ;;  %v393_v26 = vld [vmem:[#allocation6 + $0xa50] sm:$0xff]  ;;  %v400_v19 = vld [vmem:[#allocation6 + $0xa88] sm:$0xff] }
  0xe4   :  { %3277 = vmatprep.subr.bf16.mxu0 %v3276_v27  ;;  %3297 = vmatprep.subr.bf16.mxu1 %v3296_v31  ;;  %v442_v27 = vld [vmem:[#allocation6 + $0xbd8] sm:$0xff]  ;;  %v492_v31 = vld [vmem:[#allocation6 + $0xd68] sm:$0xff]  ;;  %v449_v20 = vld [vmem:[#allocation6 + $0xc10] sm:$0xff] }
  0xe5   :  { %v3318_v35 = vpack.c.bf16 %v442_v27, %v393_v26  ;;  %v399_v26 = vld [vmem:[#allocation6 + $0xa80] sm:$0xff]  ;;  %v3376_v27 = vpack.c.bf16 %v449_v20, %v400_v19  ;;  %v3660_v19 = vsub.s32 0, %v3654_v7  ;;  %v404_v20 = vld [vmem:[#allocation6 + $0xaa8] sm:$0xff] }
  0xe6   :  { %v3378_v34 = vpack.c.bf16 %v448_v28, %v399_v26  ;;  %v3524_v26 = vmov 1983009808   ;;  %v3414_v28 = vpack.c.bf16 %v354_v16, %v305_v14  ;;  %v356_v16 = vld [vmem:[#allocation6 + $0x928] sm:$0xff] }
  0xe7   :  { %3279 = vmatpush1.bf16.msra.mxu0 %v3278_v37  ;;  %3299 = vmatpush1.bf16.msra.mxu1 %v3298_v38  ;;  %v3320_v37 = vpack.c.bf16 %v541_v32, %v492_v31  ;;  %v491_v38 = vld [vmem:[#allocation6 + $0xd60] sm:$0xff]  ;;  %v498_v31 = vld [vmem:[#allocation6 + $0xd98] sm:$0xff] }
  0xe8   :  { %3281 = vmatprep.subr.bf16.mxu0 %v3280_v39  ;;  %3301 = vmatprep.subr.bf16.mxu1 %v3300_v43  ;;  %v540_v39 = vld [vmem:[#allocation6 + $0xee8] sm:$0xff]  ;;  %v547_v32 = vld [vmem:[#allocation6 + $0xf20] sm:$0xff] }
  0xe9   :  { %v104_v43 = vld [vmem:[#allocation6 + $0x148] sm:$0xff]  ;;  %v3322_v47 = vpack.c.bf16 %v540_v39, %v491_v38  ;;  %v497_v38 = vld [vmem:[#allocation6 + $0xd90] sm:$0xff]  ;;  %v3380_v39 = vpack.c.bf16 %v547_v32, %v498_v31  ;;  %v450_v32 = vld [vmem:[#allocation6 + $0xc18] sm:$0xff] }
  0xea   :  { %v3382_v46 = vpack.c.bf16 %v546_v40, %v497_v38  ;;  %v401_v31 = vld [vmem:[#allocation6 + $0xa90] sm:$0xff]  ;;  %v551_v40 = vld [vmem:[#allocation6 + $0xf40] sm:$0xff] }
  0xeb   :  { %3283 = vmatpush1.bf16.msra.mxu0 %v3282_v49  ;;  %3303 = vmatpush1.bf16.msra.mxu1 %v3302_v50  ;;  %v3344_v49 = vpack.c.bf16 %v153_v44, %v104_v43  ;;  %v103_v50 = vld [vmem:[#allocation6 + $0x140] sm:$0xff]  ;;  %v110_v43 = vld [vmem:[#allocation6 + $0x178] sm:$0xff] }
  0xec   :  { %3305 = vmatprep.subr.bf16.mxu0 %v3304_v51  ;;  %3325 = vmatprep.subr.bf16.mxu1 %v3324_v55  ;;  %v152_v51 = vld [vmem:[#allocation6 + $0x2c8] sm:$0xff]  ;;  %v202_v55 = vld [vmem:[#allocation6 + $0x458] sm:$0xff]  ;;  %v159_v44 = vld [vmem:[#allocation6 + $0x300] sm:$0xff] }
  0xed   :  { %v3346_v59 = vpack.c.bf16 %v152_v51, %v103_v50  ;;  %v109_v50 = vld [vmem:[#allocation6 + $0x170] sm:$0xff]  ;;  %v3404_v51 = vpack.c.bf16 %v159_v44, %v110_v43  ;;  %v3398_v44 = vpack.c.bf16 %v450_v32, %v401_v31 }
  0xee   :  { %2900 = vmatmul.mubr.msk.f32.vlgmr.msra.gmra.mrb[16].mxu0 %vm812_vm0, %v3590_v12  ;;  %2901 = vmatmul.mubr.msk.f32.vlgmr.msra.gmra.mrb[16].mxu1 %vm812_vm0, %v3590_v12 }
  0xef   :  { %3307 = vmatpush1.bf16.msra.mxu0 %v3306_v61  ;;  %3327 = vmatpush1.bf16.msra.mxu1 %v3326_v62  ;;  %v3348_v61 = vpack.c.bf16 %v251_v56, %v202_v55  ;;  %v201_v62 = vld [vmem:[#allocation6 + $0x450] sm:$0xff]  ;;  %v208_v55 = vld [vmem:[#allocation6 + $0x488] sm:$0xff] }
  0xf0   :  { %3309 = vmatprep.subr.bf16.mxu0 %v3308_v63  ;;  %3329 = vmatprep.subr.bf16.mxu1 %v3328_v4  ;;  %v250_v63 = vld [vmem:[#allocation6 + $0x5d8] sm:$0xff]  ;;  %v300_v4 = vld [vmem:[#allocation6 + $0x768] sm:$0xff]  ;;  %v257_v56 = vld [vmem:[#allocation6 + $0x610] sm:$0xff] }
  0xf1   :  { %2158 = vmatprep.mubr.f32.mxu0 %v3523_v0  ;;  %2229 = vmatprep.mubr.f32.mxu1 %v3523_v0  ;;  %v3350_v8 = vpack.c.bf16 %v250_v63, %v201_v62  ;;  %v254_v62 = vld [vmem:[#allocation6 + $0x5f8] sm:$0xff]  ;;  %v207_v63 = vld [vmem:[#allocation6 + $0x480] sm:$0xff]  ;;  %v3408_v1 = vpack.c.bf16 %v257_v56, %v208_v55 }
  0xf3   :  { %3311 = vmatpush1.bf16.msra.mxu0 %v3310_v10  ;;  %3331 = vmatpush1.bf16.msra.mxu1 %v3330_v11  ;;  %v3352_v10 = vpack.c.bf16 %v349_v5, %v300_v4  ;;  %v299_v11 = vld [vmem:[#allocation6 + $0x760] sm:$0xff]  ;;  %v353_v4 = vld [vmem:[#allocation6 + $0x910] sm:$0xff]  ;;  %v306_v5 = vld [vmem:[#allocation6 + $0x798] sm:$0xff] }
  0xf4   :  { %3313 = vmatprep.subr.bf16.mxu0 %v3312_v13  ;;  %3333 = vmatprep.subr.bf16.mxu1 %v3332_v17  ;;  %v348_v13 = vld [vmem:[#allocation6 + $0x8e8] sm:$0xff]  ;;  %v398_v17 = vld [vmem:[#allocation6 + $0xa78] sm:$0xff] }
  0xf5   :  { %v3354_v21 = vpack.c.bf16 %v348_v13, %v299_v11  ;;  %v303_v11 = vld [vmem:[#allocation6 + $0x780] sm:$0xff]  ;;  %v352_v13 = vld [vmem:[#allocation6 + $0x908] sm:$0xff] }
  0xf7   :  { %3315 = vmatpush1.bf16.msra.mxu0 %v3314_v23  ;;  %3335 = vmatpush1.bf16.msra.mxu1 %v3334_v24  ;;  %v3356_v23 = vpack.c.bf16 %v447_v18, %v398_v17  ;;  %v397_v24 = vld [vmem:[#allocation6 + $0xa70] sm:$0xff]  ;;  %v402_v17 = vld [vmem:[#allocation6 + $0xa98] sm:$0xff]  ;;  %v451_v18 = vld [vmem:[#allocation6 + $0xc20] sm:$0xff] }
  0xf8   :  { %3317 = vmatprep.subr.bf16.mxu0 %v3316_v25  ;;  %3337 = vmatprep.subr.bf16.mxu1 %v3336_v29  ;;  %v446_v25 = vld [vmem:[#allocation6 + $0xbf8] sm:$0xff]  ;;  %v496_v29 = vld [vmem:[#allocation6 + $0xd88] sm:$0xff] }
  0xf9   :  { %v3358_v33 = vpack.c.bf16 %v446_v25, %v397_v24  ;;  %v3669_v24 = vsub.s32 2, %v3654_v7  ;;  %v3672_v25 = vsub.s32 1, %v3654_v7 }
  0xfb   :  { %3319 = vmatpush1.bf16.msra.mxu0 %v3318_v35  ;;  %3339 = vmatpush1.bf16.msra.mxu1 %v3338_v36  ;;  %v3360_v35 = vpack.c.bf16 %v545_v30, %v496_v29  ;;  %v495_v36 = vld [vmem:[#allocation6 + $0xd80] sm:$0xff]  ;;  %v3675_v29 = vsub.s32 3, %v3654_v7  ;;  %v3396_v30 = vpack.c.bf16 %v451_v18, %v402_v17  ;;  %v3699_v17 = vsub.s32 4, %v3654_v7 }
  0xfc   :  { %3321 = vmatprep.subr.bf16.mxu0 %v3320_v37  ;;  %3341 = vmatprep.subr.bf16.mxu1 %v3340_v41  ;;  %v544_v37 = vld [vmem:[#allocation6 + $0xf08] sm:$0xff] }
  0xfd   :  { %v108_v41 = vld [vmem:[#allocation6 + $0x168] sm:$0xff]  ;;  %v3362_v45 = vpack.c.bf16 %v544_v37, %v495_v36  ;;  %v549_v37 = vld [vmem:[#allocation6 + $0xf30] sm:$0xff] }
  0xfe   :  { %v500_v36 = vld [vmem:[#allocation6 + $0xda8] sm:$0xff] }
  0xff   :  { %3323 = vmatpush1.bf16.msra.mxu0 %v3322_v47  ;;  %3343 = vmatpush1.bf16.msra.mxu1 %v3342_v48  ;;  %v3384_v47 = vpack.c.bf16 %v157_v42, %v108_v41  ;;  %v107_v48 = vld [vmem:[#allocation6 + $0x160] sm:$0xff] }
 0x100   :  { %3345 = vmatprep.subr.bf16.mxu0 %v3344_v49  ;;  %3365 = vmatprep.subr.bf16.mxu1 %v3364_v53  ;;  %v156_v49 = vld [vmem:[#allocation6 + $0x2e8] sm:$0xff]  ;;  %v206_v53 = vld [vmem:[#allocation6 + $0x478] sm:$0xff] }
 0x101   :  { %v3386_v58 = vpack.c.bf16 %v156_v49, %v107_v48  ;;  %v499_v48 = vld [vmem:[#allocation6 + $0xda0] sm:$0xff]  ;;  %v548_v49 = vld [vmem:[#allocation6 + $0xf28] sm:$0xff] }
 0x102   :  { %2902 = vmatmul.mubr.msk.f32.vlgmr.msra.gmra.mrb[18].mxu0 %vm812_vm0, %v3590_v12  ;;  %2903 = vmatmul.mubr.msk.f32.vlgmr.msra.gmra.mrb[18].mxu1 %vm812_vm0, %v3590_v12 }
 0x103   :  { %3347 = vmatpush1.bf16.msra.mxu0 %v3346_v59  ;;  %3367 = vmatpush1.bf16.msra.mxu1 %v3366_v60  ;;  %v3406_v59 = vpack.c.bf16 %v158_v52, %v109_v50  ;;  %v3388_v60 = vpack.c.bf16 %v255_v54, %v206_v53  ;;  %v501_v52 = vld [vmem:[#allocation6 + $0xdb0] sm:$0xff]  ;;  %v550_v53 = vld [vmem:[#allocation6 + $0xf38] sm:$0xff] }
 0x104   :  { %3349 = vmatprep.subr.bf16.mxu0 %v3348_v61  ;;  %3369 = vmatprep.subr.bf16.mxu1 %v3368_v2  ;;  %v205_v61 = vld [vmem:[#allocation6 + $0x470] sm:$0xff]  ;;  %v256_v2 = vld [vmem:[#allocation6 + $0x608] sm:$0xff] }
 0x105   :  { %2300 = vmatprep.mubr.f32.mxu0 %v3523_v0  ;;  %2371 = vmatprep.mubr.f32.mxu1 %v3523_v0 }
 0x107   :  { %3351 = vmatpush1.bf16.msra.mxu0 %v3350_v8  ;;  %3371 = vmatpush1.bf16.msra.mxu1 %v3370_v9  ;;  %v3390_v8 = vpack.c.bf16 %v254_v62, %v205_v61  ;;  %v3410_v9 = vpack.c.bf16 %v256_v2, %v207_v63  ;;  %v3402_v61 = vpack.c.bf16 %v548_v49, %v499_v48  ;;  %v160_v2 = vld [vmem:[#allocation6 + $0x308] sm:$0xff] }
 0x108   :  { %3353 = vmatprep.subr.bf16.mxu0 %v3352_v10  ;;  %3373 = vmatprep.subr.bf16.mxu1 %v3372_v15  ;;  %v3392_v10 = vpack.c.bf16 %v353_v4, %v304_v3  ;;  %v3412_v15 = vpack.c.bf16 %v355_v6, %v306_v5  ;;  %v3422_v63 = vpack.c.bf16 %v550_v53, %v501_v52 }
 0x10b   :  { %3355 = vmatpush1.bf16.msra.mxu0 %v3354_v21  ;;  %3375 = vmatpush1.bf16.msra.mxu1 %v3374_v22  ;;  %v453_v21 = vld [vmem:[#allocation6 + $0xc30] sm:$0xff]  ;;  %v3394_v22 = vpack.c.bf16 %v352_v13, %v303_v11  ;;  %v258_v11 = vld [vmem:[#allocation6 + $0x618] sm:$0xff] }
 0x10c   :  { %3357 = vmatprep.subr.bf16.mxu0 %v3356_v23  ;;  %3377 = vmatprep.subr.bf16.mxu1 %v3376_v27  ;;  %v3666_v23 = vld [vmem:[%s3839_s3] sm:$0xff]  ;;  %v2642_v27 = vunpack.c.l.s4 %v3524_v26  ;;  %v405_v26 = vld [vmem:[#allocation6 + $0xab0] sm:$0xff] }
 0x10d   :  { %v570_v38 = vrot.slane %v3666_v23, %v3660_v19  ;;  %v578_v41 = vrot.slane %v3666_v23, %v3669_v24  ;;  %v574_v42 = vrot.slane %v3666_v23, %v3672_v25 }
 0x10e   :  { %v2643_v43 = vunpack.c.0.s8 %v2642_v27  ;;  %v454_v27 = vld [vmem:[#allocation6 + $0xc38] sm:$0xff] }
 0x10f   :  { %3359 = vmatpush1.bf16.msra.mxu0 %v3358_v33  ;;  %3379 = vmatpush1.bf16.msra.mxu1 %v3378_v34  ;;  %v403_v33 = vld [vmem:[#allocation6 + $0xaa0] sm:$0xff]  ;;  %v3416_v34 = vpack.c.bf16 %v453_v21, %v404_v20  ;;  %v3702_v20 = vsub.s32 6, %v3654_v7  ;;  %v3705_v21 = vsub.s32 5, %v3654_v7  ;;  %v3434_v31 = vpack.c.bf16 %v454_v27, %v405_v26 }
 0x110   :  { %3361 = vmatprep.subr.bf16.mxu0 %v3360_v35  ;;  %3381 = vmatprep.subr.bf16.mxu1 %v3380_v39  ;;  %v452_v35 = vld [vmem:[#allocation6 + $0xc28] sm:$0xff]  ;;  %v502_v39 = vld [vmem:[#allocation6 + $0xdb8] sm:$0xff] }
 0x113   :  { %3363 = vmatpush1.bf16.msra.mxu0 %v3362_v45  ;;  %3383 = vmatpush1.bf16.msra.mxu1 %v3382_v46  ;;  %v582_v45 = vrot.slane %v3666_v23, %v3675_v29  ;;  %v3418_v46 = vpack.c.bf16 %v452_v35, %v403_v33  ;;  %v503_v33 = vld [vmem:[#allocation6 + $0xdc0] sm:$0xff] }
 0x114   :  { %3385 = vmatprep.subr.bf16.mxu0 %v3384_v47  ;;  %3405 = vmatprep.subr.bf16.mxu1 %v3404_v51  ;;  %v3400_v47 = vpack.c.bf16 %v549_v37, %v500_v36  ;;  %v3420_v51 = vpack.c.bf16 %v551_v40, %v502_v39 }
 0x116   :  { %2904 = vmatmul.mubr.msk.f32.vlgmr.msra.gmra.mrb[20].mxu0 %vm812_vm0, %v3590_v12  ;;  %2905 = vmatmul.mubr.msk.f32.vlgmr.msra.gmra.mrb[20].mxu1 %vm812_vm0, %v3590_v12 }
 0x117   :  { %3387 = vmatpush1.bf16.msra.mxu0 %v3386_v58  ;;  %3407 = vmatpush1.bf16.msra.mxu1 %v3406_v59  ;;  %v3686_v59 = vsub.s32 %v2643_v43, %v3654_v7 }
 0x118   :  { %3389 = vmatprep.subr.bf16.mxu0 %v3388_v60  ;;  %3409 = vmatprep.subr.bf16.mxu1 %v3408_v1  ;;  %v111_v1 = vld [vmem:[#allocation6 + $0x180] sm:$0xff] }
 0x119   :  { %2442 = vmatprep.mubr.f32.mxu0 %v3523_v0  ;;  %2513 = vmatprep.mubr.f32.mxu1 %v3523_v0  ;;  %v3425_v6 = vpack.c.bf16 %v160_v2, %v111_v1 }
 0x11b   :  { %3391 = vmatpush1.bf16.msra.mxu0 %v3390_v8  ;;  %3411 = vmatpush1.bf16.msra.mxu1 %v3410_v9  ;;  %v3525_v9 = vmov 0.0|0.0  }
 0x11c   :  { %3393 = vmatprep.subr.bf16.mxu0 %v3392_v10  ;;  %3413 = vmatprep.subr.bf16.mxu1 %v3412_v15  ;;  %v209_v10 = vld [vmem:[#allocation6 + $0x490] sm:$0xff]  ;;  %v307_v15 = vld [vmem:[#allocation6 + $0x7a0] sm:$0xff] }
 0x11d   :  { %v3428_v14 = vpack.c.bf16 %v258_v11, %v209_v10  ;;  %v3431_v18 = vpack.c.bf16 %v356_v16, %v307_v15 }
 0x11f   :  { %3395 = vmatpush1.bf16.msra.mxu0 %v3394_v22  ;;  %3415 = vmatpush1.bf16.msra.mxu1 %v3414_v28  ;;  %v3708_v22 = vsub.s32 7, %v3654_v7  ;;  %v594_v28 = vrot.slane %v3666_v23, %v3702_v20  ;;  %v552_v7 = vld [vmem:[#allocation6 + $0xf48] sm:$0xff] }
 0x120   :  { %3397 = vmatprep.subr.bf16.mxu0 %v3396_v30  ;;  %3417 = vmatprep.subr.bf16.mxu1 %v3416_v34  ;;  %v590_v30 = vrot.slane %v3666_v23, %v3705_v21 }
 0x121   :  { %v882_v50 = vpop.f32.mrb[0].mxu0  ;;  %v953_v55 = vpop.f32.mrb[0].mxu1  ;;  %v598_v32 = vrot.slane %v3666_v23, %v3708_v22 }
 0x122   :  { %v883_v54 = vadd.f32 %v882_v50, %v570_v38  ;;  %v884_v56 = vpop.f32.mrb[1].mxu0  ;;  %v954_v57 = vadd.f32 %v953_v55, %v578_v41  ;;  %v955_v60 = vpop.f32.mrb[1].mxu1  ;;  %v3437_v41 = vpack.c.bf16 %v552_v7, %v503_v33 }
 0x123   :  { %v885_v58 = vadd.f32 %v884_v56, %v574_v42  ;;  %3399 = vmatpush1.bf16.msra.mxu0 %v3398_v44  ;;  %v956_v62 = vadd.f32 %v955_v60, %v582_v45  ;;  %3419 = vmatpush1.bf16.msra.mxu1 %v3418_v46 }
 0x124   :  { %3401 = vmatprep.subr.bf16.mxu0 %v3400_v47  ;;  %3421 = vmatprep.subr.bf16.mxu1 %v3420_v51  ;;  %v554_v47 = vld [vmem:[%s3839_s3 + $0x8] sm:$0xff] }
 0x125   :  { %v2639_v3 = vcombine.low %v883_v54, %v885_v58  ;;  %v2640_v4 = vcombine.low %v954_v57, %v956_v62  ;;  %v602_v48 = vrot.slane %v554_v47, %v3660_v19  ;;  %v610_v49 = vrot.slane %v554_v47, %v3669_v24 }
 0x126   :  { %v606_v50 = vrot.slane %v554_v47, %v3672_v25  ;;  %v614_v51 = vrot.slane %v554_v47, %v3675_v29  ;;  %v618_v2 = vrot.slane %v554_v47, %v3699_v17 }
 0x127   :  { %v2647_v5 = vrot.slane %v2639_v3, %v3686_v59  ;;  %3403 = vmatpush1.bf16.msra.mxu0 %v3402_v61  ;;  %v2654_v8 = vrot.slane %v2640_v4, %v3686_v59  ;;  %3423 = vmatpush1.bf16.msra.mxu1 %v3422_v63  ;;  %v626_v3 = vrot.slane %v554_v47, %v3702_v20 }
 0x128   :  { %3424 = vmatprep.subr.bf16.mxu0 %v3525_v9  ;;  %v622_v4 = vrot.slane %v554_v47, %v3705_v21 }
 0x129   :  { %v2655_v13 = vcombine.low %v2647_v5, %v2654_v8  ;;  %v630_v5 = vrot.slane %v554_v47, %v3708_v22 }
 0x12a   :  { %2906 = vmatmul.mubr.msk.f32.vlgmr.msra.gmra.mrb[22].mxu0 %vm812_vm0, %v3590_v12  ;;  %2907 = vmatmul.mubr.msk.f32.vlgmr.msra.gmra.mrb[22].mxu1 %vm812_vm0, %v3590_v12 }
 0x12b   :  { %3426 = vmatpush3.bf16.msra.mxu0 %v3425_v6  ;;  %2863 = vst [vmem:[%s3840_s4] sm:$0xff] %v2655_v13  ;;  %2941 = vmatprep.mubr.msk.f32.mxu0 %vm3526_vm1, %v3523_v0  ;;  %v586_v0 = vrot.slane %v3666_v23, %v3699_v17 }
 0x12c   :  { %3427 = vmatprep.subr.bf16.mxu0 %v3525_v9 }
 0x12f   :  { %3429 = vmatpush3.bf16.msra.mxu0 %v3428_v14 }
 0x130   :  { %3430 = vmatprep.subr.bf16.mxu0 %v3525_v9 }
 0x133   :  { %3432 = vmatpush3.bf16.msra.mxu0 %v3431_v18 }
 0x134   :  { %3433 = vmatprep.subr.bf16.mxu0 %v3525_v9 }
 0x135   :  { %v1024_v34 = vpop.f32.mrb[2].mxu0  ;;  %v1095_v36 = vpop.f32.mrb[2].mxu1 }
 0x136   :  { %v1025_v35 = vadd.f32 %v1024_v34, %v586_v0  ;;  %v1026_v37 = vpop.f32.mrb[3].mxu0  ;;  %v1096_v38 = vadd.f32 %v1095_v36, %v594_v28  ;;  %v1097_v40 = vpop.f32.mrb[3].mxu1  ;;  %v555_v28 = vld [vmem:[%s3839_s3 + $0x10] sm:$0xff] }
 0x137   :  { %v1027_v39 = vadd.f32 %v1026_v37, %v590_v30  ;;  %3435 = vmatpush3.bf16.msra.mxu0 %v3434_v31  ;;  %v1098_v42 = vadd.f32 %v1097_v40, %v598_v32  ;;  %v634_v30 = vrot.slane %v555_v28, %v3660_v19  ;;  %v642_v31 = vrot.slane %v555_v28, %v3669_v24 }
 0x138   :  { %3436 = vmatprep.subr.bf16.mxu0 %v3525_v9  ;;  %v638_v32 = vrot.slane %v555_v28, %v3672_v25  ;;  %v646_v33 = vrot.slane %v555_v28, %v3675_v29  ;;  %v654_v47 = vrot.slane %v555_v28, %v3705_v21 }
 0x139   :  { %v2656_v43 = vcombine.low %v1025_v35, %v1027_v39  ;;  %v2657_v44 = vcombine.low %v1096_v38, %v1098_v42 }
 0x13b   :  { %v2664_v45 = vrot.slane %v2656_v43, %v3686_v59  ;;  %3438 = vmatpush3.bf16.msra.mxu0 %v3437_v41  ;;  %v2671_v23 = vrot.slane %v2657_v44, %v3686_v59 }
 0x13d   :  { %v2672_v46 = vcombine.low %v2664_v45, %v2671_v23  ;;  %v650_v23 = vrot.slane %v555_v28, %v3699_v17 }
 0x13e   :  { %2942 = vmatmul.mubr.msk.f32.vlgmr.msra.gmra.mrb[24].mxu0 %vm812_vm0, %v3590_v12 }
 0x13f   :  { %2864 = vst [vmem:[%s3840_s4 + $0x8] sm:$0xff] %v2672_v46  ;;  %v658_v46 = vrot.slane %v555_v28, %v3702_v20 }
 0x149   :  { %v1166_v52 = vpop.f32.mrb[4].mxu0  ;;  %v1237_v54 = vpop.f32.mrb[4].mxu1 }
 0x14a   :  { %v1167_v53 = vadd.f32 %v1166_v52, %v602_v48  ;;  %v1168_v12 = vpop.f32.mrb[5].mxu0  ;;  %v1238_v55 = vadd.f32 %v1237_v54, %v610_v49  ;;  %v1239_v57 = vpop.f32.mrb[5].mxu1  ;;  %v662_v48 = vrot.slane %v555_v28, %v3708_v22 }
 0x14b   :  { %v1169_v56 = vadd.f32 %v1168_v12, %v606_v50  ;;  %v1240_v58 = vadd.f32 %v1239_v57, %v614_v51 }
 0x14d   :  { %v2673_v60 = vcombine.low %v1167_v53, %v1169_v56  ;;  %v2674_v61 = vcombine.low %v1238_v55, %v1240_v58 }
 0x14f   :  { %v2681_v62 = vrot.slane %v2673_v60, %v3686_v59  ;;  %v2688_v63 = vrot.slane %v2674_v61, %v3686_v59 }
 0x151   :  { %v2689_v1 = vcombine.low %v2681_v62, %v2688_v63  ;;  %v556_v62 = vld [vmem:[%s3839_s3 + $0x18] sm:$0xff] }
 0x152   :  { %v666_v63 = vrot.slane %v556_v62, %v3660_v19  ;;  %v686_v28 = vrot.slane %v556_v62, %v3705_v21 }
 0x153   :  { %2865 = vst [vmem:[%s3840_s4 + $0x10] sm:$0xff] %v2689_v1  ;;  %v674_v1 = vrot.slane %v556_v62, %v3669_v24 }
 0x15d   :  { %v1308_v6 = vpop.f32.mrb[6].mxu0  ;;  %v1379_v9 = vpop.f32.mrb[6].mxu1 }
 0x15e   :  { %v1309_v8 = vadd.f32 %v1308_v6, %v618_v2  ;;  %v1310_v10 = vpop.f32.mrb[7].mxu0  ;;  %v1380_v11 = vadd.f32 %v1379_v9, %v626_v3  ;;  %v1381_v14 = vpop.f32.mrb[7].mxu1  ;;  %v670_v2 = vrot.slane %v556_v62, %v3672_v25  ;;  %v678_v3 = vrot.slane %v556_v62, %v3675_v29 }
 0x15f   :  { %v1311_v13 = vadd.f32 %v1310_v10, %v622_v4  ;;  %v1382_v15 = vadd.f32 %v1381_v14, %v630_v5 }
 0x161   :  { %v2690_v16 = vcombine.low %v1309_v8, %v1311_v13  ;;  %v2691_v18 = vcombine.low %v1380_v11, %v1382_v15 }
 0x163   :  { %v2698_v26 = vrot.slane %v2690_v16, %v3686_v59  ;;  %v2705_v27 = vrot.slane %v2691_v18, %v3686_v59 }
 0x165   :  { %v2706_v0 = vcombine.low %v2698_v26, %v2705_v27  ;;  %v682_v27 = vrot.slane %v556_v62, %v3699_v17 }
 0x167   :  { %2866 = vst [vmem:[%s3840_s4 + $0x18] sm:$0xff] %v2706_v0  ;;  %v690_v0 = vrot.slane %v556_v62, %v3702_v20 }
 0x171   :  { %v1450_v7 = vpop.f32.mrb[8].mxu0  ;;  %v1521_v35 = vpop.f32.mrb[8].mxu1 }
 0x172   :  { %v1451_v34 = vadd.f32 %v1450_v7, %v634_v30  ;;  %v1452_v36 = vpop.f32.mrb[9].mxu0  ;;  %v1522_v37 = vadd.f32 %v1521_v35, %v642_v31  ;;  %v1523_v39 = vpop.f32.mrb[9].mxu1  ;;  %v694_v30 = vrot.slane %v556_v62, %v3708_v22 }
 0x173   :  { %v1453_v38 = vadd.f32 %v1452_v36, %v638_v32  ;;  %v1524_v40 = vadd.f32 %v1523_v39, %v646_v33 }
 0x175   :  { %v2707_v41 = vcombine.low %v1451_v34, %v1453_v38  ;;  %v2708_v42 = vcombine.low %v1522_v37, %v1524_v40 }
 0x177   :  { %v2715_v43 = vrot.slane %v2707_v41, %v3686_v59  ;;  %v2722_v44 = vrot.slane %v2708_v42, %v3686_v59 }
 0x179   :  { %v2723_v45 = vcombine.low %v2715_v43, %v2722_v44  ;;  %v557_v43 = vld [vmem:[%s3839_s3 + $0x20] sm:$0xff] }
 0x17a   :  { %v698_v44 = vrot.slane %v557_v43, %v3660_v19  ;;  %v718_v62 = vrot.slane %v557_v43, %v3705_v21 }
 0x17b   :  { %2867 = vst [vmem:[%s3840_s4 + $0x20] sm:$0xff] %v2723_v45  ;;  %v706_v45 = vrot.slane %v557_v43, %v3669_v24 }
 0x185   :  { %v1592_v49 = vpop.f32.mrb[10].mxu0  ;;  %v1663_v51 = vpop.f32.mrb[10].mxu1 }
 0x186   :  { %v1593_v50 = vadd.f32 %v1592_v49, %v650_v23  ;;  %v1594_v52 = vpop.f32.mrb[11].mxu0  ;;  %v1664_v53 = vadd.f32 %v1663_v51, %v658_v46  ;;  %v1665_v12 = vpop.f32.mrb[11].mxu1  ;;  %v702_v23 = vrot.slane %v557_v43, %v3672_v25  ;;  %v710_v46 = vrot.slane %v557_v43, %v3675_v29 }
 0x187   :  { %v1595_v54 = vadd.f32 %v1594_v52, %v654_v47  ;;  %v1666_v55 = vadd.f32 %v1665_v12, %v662_v48 }
 0x189   :  { %v2724_v56 = vcombine.low %v1593_v50, %v1595_v54  ;;  %v2725_v57 = vcombine.low %v1664_v53, %v1666_v55 }
 0x18b   :  { %v2732_v58 = vrot.slane %v2724_v56, %v3686_v59  ;;  %v2739_v60 = vrot.slane %v2725_v57, %v3686_v59 }
 0x18d   :  { %v2740_v61 = vcombine.low %v2732_v58, %v2739_v60  ;;  %v714_v60 = vrot.slane %v557_v43, %v3699_v17 }
 0x18f   :  { %2868 = vst [vmem:[%s3840_s4 + $0x28] sm:$0xff] %v2740_v61  ;;  %v722_v61 = vrot.slane %v557_v43, %v3702_v20 }
 0x199   :  { %v1734_v4 = vpop.f32.mrb[12].mxu0  ;;  %v1805_v6 = vpop.f32.mrb[12].mxu1 }
 0x19a   :  { %v1735_v5 = vadd.f32 %v1734_v4, %v666_v63  ;;  %v1736_v8 = vpop.f32.mrb[13].mxu0  ;;  %v1806_v9 = vadd.f32 %v1805_v6, %v674_v1  ;;  %v1807_v11 = vpop.f32.mrb[13].mxu1  ;;  %v726_v63 = vrot.slane %v557_v43, %v3708_v22 }
 0x19b   :  { %v1737_v10 = vadd.f32 %v1736_v8, %v670_v2  ;;  %v1808_v13 = vadd.f32 %v1807_v11, %v678_v3 }
 0x19d   :  { %v2741_v14 = vcombine.low %v1735_v5, %v1737_v10  ;;  %v2742_v15 = vcombine.low %v1806_v9, %v1808_v13 }
 0x19f   :  { %v2749_v16 = vrot.slane %v2741_v14, %v3686_v59  ;;  %v2756_v18 = vrot.slane %v2742_v15, %v3686_v59 }
 0x1a1   :  { %v2757_v26 = vcombine.low %v2749_v16, %v2756_v18  ;;  %v558_v16 = vld [vmem:[%s3839_s3 + $0x28] sm:$0xff] }
 0x1a2   :  { %v730_v18 = vrot.slane %v558_v16, %v3660_v19 }
 0x1a3   :  { %2869 = vst [vmem:[%s3840_s4 + $0x30] sm:$0xff] %v2757_v26  ;;  %v738_v26 = vrot.slane %v558_v16, %v3669_v24  ;;  %v746_v24 = vrot.slane %v558_v16, %v3699_v17 }
 0x1ad   :  { %v1876_v31 = vpop.f32.mrb[14].mxu0  ;;  %v1947_v33 = vpop.f32.mrb[14].mxu1 }
 0x1ae   :  { %v1877_v32 = vadd.f32 %v1876_v31, %v682_v27  ;;  %v1878_v7 = vpop.f32.mrb[15].mxu0  ;;  %v1948_v34 = vadd.f32 %v1947_v33, %v690_v0  ;;  %v1949_v36 = vpop.f32.mrb[15].mxu1  ;;  %v734_v27 = vrot.slane %v558_v16, %v3672_v25  ;;  %v742_v0 = vrot.slane %v558_v16, %v3675_v29 }
 0x1af   :  { %v1879_v35 = vadd.f32 %v1878_v7, %v686_v28  ;;  %v1950_v37 = vadd.f32 %v1949_v36, %v694_v30  ;;  %v754_v25 = vrot.slane %v558_v16, %v3702_v20  ;;  %v750_v29 = vrot.slane %v558_v16, %v3705_v21  ;;  %v2883_v20 = vld [vmem:[%s3839_s3 + $0x30] ss:$0 sm:$0xff] }
 0x1b1   :  { %v2758_v38 = vcombine.low %v1877_v32, %v1879_v35  ;;  %v2759_v39 = vcombine.low %v1948_v34, %v1950_v37 }
 0x1b3   :  { %v2766_v40 = vrot.slane %v2758_v38, %v3686_v59  ;;  %v2773_v41 = vrot.slane %v2759_v39, %v3686_v59 }
 0x1b5   :  { %v2774_v42 = vcombine.low %v2766_v40, %v2773_v41  ;;  %v758_v40 = vrot.slane %v558_v16, %v3708_v22 }
 0x1b7   :  { %2870 = vst [vmem:[%s3840_s4 + $0x38] sm:$0xff] %v2774_v42 }
 0x1c1   :  { %v2018_v47 = vpop.f32.mrb[16].mxu0  ;;  %v2089_v49 = vpop.f32.mrb[16].mxu1 }
 0x1c2   :  { %v2019_v48 = vadd.f32 %v2018_v47, %v698_v44  ;;  %v2020_v50 = vpop.f32.mrb[17].mxu0  ;;  %v2090_v51 = vadd.f32 %v2089_v49, %v706_v45  ;;  %v2091_v53 = vpop.f32.mrb[17].mxu1 }
 0x1c3   :  { %v2021_v52 = vadd.f32 %v2020_v50, %v702_v23  ;;  %v2092_v54 = vadd.f32 %v2091_v53, %v710_v46 }
 0x1c5   :  { %v2775_v12 = vcombine.low %v2019_v48, %v2021_v52  ;;  %v2776_v55 = vcombine.low %v2090_v51, %v2092_v54 }
 0x1c7   :  { %v2783_v56 = vrot.slane %v2775_v12, %v3686_v59  ;;  %v2790_v57 = vrot.slane %v2776_v55, %v3686_v59 }
 0x1c9   :  { %v2791_v58 = vcombine.low %v2783_v56, %v2790_v57 }
 0x1cb   :  { %2871 = vst [vmem:[%s3840_s4 + $0x40] sm:$0xff] %v2791_v58 }
 0x1d5   :  { %v2160_v1 = vpop.f32.mrb[18].mxu0  ;;  %v2231_v3 = vpop.f32.mrb[18].mxu1 }
 0x1d6   :  { %v2161_v2 = vadd.f32 %v2160_v1, %v714_v60  ;;  %v2162_v4 = vpop.f32.mrb[19].mxu0  ;;  %v2232_v5 = vadd.f32 %v2231_v3, %v722_v61  ;;  %v2233_v8 = vpop.f32.mrb[19].mxu1 }
 0x1d7   :  { %v2163_v6 = vadd.f32 %v2162_v4, %v718_v62  ;;  %v2234_v9 = vadd.f32 %v2233_v8, %v726_v63 }
 0x1d9   :  { %v2792_v10 = vcombine.low %v2161_v2, %v2163_v6  ;;  %v2793_v11 = vcombine.low %v2232_v5, %v2234_v9 }
 0x1db   :  { %v2800_v13 = vrot.slane %v2792_v10, %v3686_v59  ;;  %v2807_v14 = vrot.slane %v2793_v11, %v3686_v59 }
 0x1dd   :  { %v2808_v15 = vcombine.low %v2800_v13, %v2807_v14 }
 0x1df   :  { %2872 = vst [vmem:[%s3840_s4 + $0x48] sm:$0xff] %v2808_v15 }
 0x1e9   :  { %v2302_v28 = vpop.f32.mrb[20].mxu0  ;;  %v2373_v31 = vpop.f32.mrb[20].mxu1 }
 0x1ea   :  { %v2303_v30 = vadd.f32 %v2302_v28, %v730_v18  ;;  %v2304_v32 = vpop.f32.mrb[21].mxu0  ;;  %v2374_v33 = vadd.f32 %v2373_v31, %v738_v26  ;;  %v2375_v34 = vpop.f32.mrb[21].mxu1 }
 0x1eb   :  { %v2305_v7 = vadd.f32 %v2304_v32, %v734_v27  ;;  %v2376_v35 = vadd.f32 %v2375_v34, %v742_v0 }
 0x1ed   :  { %v2809_v36 = vcombine.low %v2303_v30, %v2305_v7  ;;  %v2810_v37 = vcombine.low %v2374_v33, %v2376_v35 }
 0x1ef   :  { %v2817_v38 = vrot.slane %v2809_v36, %v3686_v59  ;;  %v2824_v19 = vrot.slane %v2810_v37, %v3686_v59 }
 0x1f1   :  { %v2825_v39 = vcombine.low %v2817_v38, %v2824_v19 }
 0x1f3   :  { %2873 = vst [vmem:[%s3840_s4 + $0x50] sm:$0xff] %v2825_v39 }
 0x1fd   :  { %v2444_v41 = vpop.f32.mrb[22].mxu0  ;;  %v2515_v43 = vpop.f32.mrb[22].mxu1 }
 0x1fe   :  { %v2445_v42 = vadd.f32 %v2444_v41, %v746_v24  ;;  %v2446_v44 = vpop.f32.mrb[23].mxu0  ;;  %v2516_v45 = vadd.f32 %v2515_v43, %v754_v25  ;;  %v2517_v46 = vpop.f32.mrb[23].mxu1 }
 0x1ff   :  { %v2447_v23 = vadd.f32 %v2446_v44, %v750_v29  ;;  %v2518_v47 = vadd.f32 %v2517_v46, %v758_v40 }
 0x201   :  { %v2826_v48 = vcombine.low %v2445_v42, %v2447_v23  ;;  %v2827_v49 = vcombine.low %v2516_v45, %v2518_v47 }
 0x203   :  { %v2834_v50 = vrot.slane %v2826_v48, %v3686_v59  ;;  %v2841_v17 = vrot.slane %v2827_v49, %v3686_v59 }
 0x205   :  { %v2842_v51 = vcombine.low %v2834_v50, %v2841_v17 }
 0x207   :  { %2874 = vst [vmem:[%s3840_s4 + $0x58] sm:$0xff] %v2842_v51 }
 0x211   :  { %v2586_v21 = vpop.f32.mrb[24].mxu0 }
 0x212   :  { %v2587_v22 = vadd.f32 %v2883_v20, %v2586_v21  ;;  %v2943_v52 = vpop.f32.mrb[25].mxu0 }
 0x214   :  { %2909 = vst.sshfl [vmem:[%s3840_s4 + $0x60] sm:$0x3 pattern:$0x76325410] %v2587_v22 }
 0x215   :  { %2880 = vsyncpa [#allocation3], 1 }
 0x216   :  { %2881 = vsyncpa [#allocation5], 1 }

</bundles_post_ra>
